<compile_context>
chip_gen: v5e
topology: v5e:2x2
jax: 0.10.0
libtpu: 0.0.40
codegen_flags: <defaults>
</compile_context>

<pallas_src>
import functools

import jax
import jax.numpy as jnp
from jax.experimental import pallas as pl
from jax.experimental.pallas import tpu as pltpu

BN_EPS = 1e-3
NUM_CLASSES = 8
LAST_CHANNEL = 1280

# torchvision EfficientNetV2-M inverted-residual config:
# (block_type, expand_ratio, kernel, stride, in_ch, out_ch, num_layers)
V2M_CFG = [
    ("fused", 1, 3, 1, 24, 24, 3),
    ("fused", 4, 3, 2, 24, 48, 5),
    ("fused", 4, 3, 2, 48, 80, 5),
    ("mb",    4, 3, 2, 80, 160, 7),
    ("mb",    6, 3, 1, 160, 176, 14),
    ("mb",    6, 3, 2, 176, 304, 18),
    ("mb",    6, 3, 1, 304, 512, 5),
]


def pad128(c):
    return ((c + 127) // 128) * 128


# ----------------------------- in-kernel helpers ----------------------------

def _act(y, act):
    """Activation in f32; reciprocal goes to the EUP slot (approx=True)."""
    if act == "silu":
        return y * pl.reciprocal(1.0 + jnp.exp(-y), approx=True)
    if act == "sigmoid":
        return pl.reciprocal(1.0 + jnp.exp(-y), approx=True)
    return y


# ----------------------------- Pallas kernels ------------------------------

def _dense_kernel(a_ref, b_ref, s_ref, c_ref, o_ref, *, act):
    """o = act((a @ b) * scale + shift); a,b are bf16, accumulate f32 on the MXU."""
    y = jnp.dot(a_ref[...], b_ref[...], preferred_element_type=jnp.float32)
    y = y * s_ref[...] + c_ref[...]
    o_ref[...] = _act(y, act).astype(o_ref.dtype)


def _pw_kernel(*refs, act, has_gate, has_res):
    """1x1 conv over (B, HW, Cin) with fused BN/act + optional SE gate (input side)
    and optional residual add (output side)."""
    x_ref, w_ref, s_ref, c_ref = refs[0], refs[1], refs[2], refs[3]
    i = 4
    g_ref = None
    r_ref = None
    if has_gate:
        g_ref = refs[i]
        i += 1
    if has_res:
        r_ref = refs[i]
        i += 1
    o_ref = refs[i]

    a = x_ref[0]                                          # (tm, Cin) bf16
    if has_gate:
        a = (a.astype(jnp.float32) * g_ref[0]).astype(jnp.bfloat16)
    y = jnp.dot(a, w_ref[...], preferred_element_type=jnp.float32)
    y = y * s_ref[...] + c_ref[...]
    y = _act(y, act)
    if has_res:
        y = y + r_ref[0].astype(jnp.float32)
    o_ref[0] = y.astype(o_ref.dtype)


def _conv3x3_s1_kernel(*refs, H, W, has_res):
    """Stride-1 3x3 conv + folded BN + SiLU (+ optional residual) for one image.
    Accumulates 9 shifted MXU dots in a VMEM f32 accumulator -> no im2col in HBM."""
    x_ref, w_ref, s_ref, c_ref = refs[0], refs[1], refs[2], refs[3]
    r_ref = refs[4] if has_res else None
    o_ref = refs[-1]
    Cin = w_ref.shape[1]
    Cout = w_ref.shape[2]

    acc = jnp.zeros((H * W, Cout), jnp.float32)
    for tap in range(9):
        di, dj = divmod(tap, 3)
        a = x_ref[0, di:di + H, dj:dj + W, :].reshape(H * W, Cin)   # bf16 tap slice
        acc = acc + jnp.dot(a, w_ref[tap], preferred_element_type=jnp.float32)

    y = acc * s_ref[...] + c_ref[...]
    y = _act(y, "silu")
    if has_res:
        y = y + r_ref[0].reshape(H * W, Cout).astype(jnp.float32)
    o_ref[0] = y.reshape(H, W, Cout).astype(o_ref.dtype)


def _dw3x3_kernel(x_ref, w_ref, s_ref, c_ref, o_ref, p_ref, *, H, W, inv_hw):
    """Depthwise 3x3 (stride-1, pad-1) + folded BN + SiLU for one image; also emits the
    per-channel spatial mean (SE squeeze) so no extra pooling pass over HBM is needed."""
    acc = x_ref[0, 0:H, 0:W, :].astype(jnp.float32) * w_ref[0]
    for tap in range(1, 9):
        di, dj = divmod(tap, 3)
        acc = acc + x_ref[0, di:di + H, dj:dj + W, :].astype(jnp.float32) * w_ref[tap]
    y = acc * s_ref[0] + c_ref[0]
    y = _act(y, "silu")
    o_ref[0] = y.astype(o_ref.dtype)
    p_ref[0] = jnp.sum(y, axis=(0, 1), keepdims=True) * inv_hw      # (1, 1, C)


def _mean_kernel(x_ref, o_ref, *, inv):
    o_ref[...] = jnp.sum(x_ref[...].astype(jnp.float32), axis=1, keepdims=True) * inv


# ------------------------------- wrappers -----------------------------------

def dense(a, w, scale, shift, act="none", out_dtype=jnp.bfloat16):
    """(M,K)@(K,N) GEMM, bf16 operands, fused per-output-channel affine + activation."""
    M, K = a.shape
    N = w.shape[1]
    a = a.astype(jnp.bfloat16)
    Mp = M
    if M > 128 and M % 128 != 0:
        Mp = pad128(M)
        a = jnp.pad(a, ((0, Mp - M), (0, 0)))        # robust M tiling (no huge single block)
    if Mp % 512 == 0:
        tm = 512
    elif Mp % 256 == 0:
        tm = 256
    elif Mp % 128 == 0:
        tm = 128
    else:
        tm = Mp                                       # small M (SE / classifier rows)
    out = pl.pallas_call(
        functools.partial(_dense_kernel, act=act),
        out_shape=jax.ShapeDtypeStruct((Mp, N), out_dtype),
        grid_spec=pltpu.PrefetchScalarGridSpec(
            num_scalar_prefetch=0,
            grid=(Mp // tm,),
            in_specs=[
                pl.BlockSpec((tm, K), lambda i: (i, 0)),
                pl.BlockSpec((K, N), lambda i: (0, 0)),
                pl.BlockSpec((1, N), lambda i: (0, 0)),
                pl.BlockSpec((1, N), lambda i: (0, 0)),
            ],
            out_specs=pl.BlockSpec((tm, N), lambda i: (i, 0)),
        ),
        compiler_params=pltpu.CompilerParams(dimension_semantics=("parallel",)),
    )(a, w, scale.reshape(1, N), shift.reshape(1, N))
    return out[:M] if Mp != M else out


def conv1x1(x, w, scale, shift, act="none", gate=None, residual=None,
            out_dtype=jnp.bfloat16):
    """1x1 conv on (B, HW, Cin) with optional fused SE gate and residual add."""
    B, HW, Cin = x.shape
    N = w.shape[1]
    if HW % 256 == 0:
        tm = 256
    elif HW % 128 == 0:
        tm = 128
    else:
        tm = HW
    in_specs = [
        pl.BlockSpec((1, tm, Cin), lambda b, i: (b, i, 0)),
        pl.BlockSpec((Cin, N), lambda b, i: (0, 0)),
        pl.BlockSpec((1, N), lambda b, i: (0, 0)),
        pl.BlockSpec((1, N), lambda b, i: (0, 0)),
    ]
    args = [x, w, scale.reshape(1, N), shift.reshape(1, N)]
    if gate is not None:
        in_specs.append(pl.BlockSpec((1, 1, Cin), lambda b, i: (b, 0, 0)))
        args.append(gate.reshape(B, 1, Cin).astype(jnp.float32))
    if residual is not None:
        in_specs.append(pl.BlockSpec((1, tm, N), lambda b, i: (b, i, 0)))
        args.append(residual)
    return pl.pallas_call(
        functools.partial(_pw_kernel, act=act,
                          has_gate=gate is not None, has_res=residual is not None),
        out_shape=jax.ShapeDtypeStruct((B, HW, N), out_dtype),
        grid_spec=pltpu.PrefetchScalarGridSpec(
            num_scalar_prefetch=0,
            grid=(B, HW // tm),
            in_specs=in_specs,
            out_specs=pl.BlockSpec((1, tm, N), lambda b, i: (b, i, 0)),
        ),
        compiler_params=pltpu.CompilerParams(
            dimension_semantics=("parallel", "parallel")),
    )(*args)


def conv3x3_s1_bn_silu(x, w, scale, shift, residual=None):
    """Stride-1 3x3 conv + BN + SiLU on NHWC bf16 input (in-kernel, no im2col)."""
    B, H, W, Cin = x.shape
    Cout = w.shape[2]
    xp = jnp.pad(x, ((0, 0), (1, 1), (1, 1), (0, 0)))
    in_specs = [
        pl.BlockSpec((1, H + 2, W + 2, Cin), lambda b: (b, 0, 0, 0)),
        pl.BlockSpec((9, Cin, Cout), lambda b: (0, 0, 0)),
        pl.BlockSpec((1, Cout), lambda b: (0, 0)),
        pl.BlockSpec((1, Cout), lambda b: (0, 0)),
    ]
    args = [xp, w, scale.reshape(1, Cout), shift.reshape(1, Cout)]
    if residual is not None:
        in_specs.append(pl.BlockSpec((1, H, W, Cout), lambda b: (b, 0, 0, 0)))
        args.append(residual)
    return pl.pallas_call(
        functools.partial(_conv3x3_s1_kernel, H=H, W=W, has_res=residual is not None),
        out_shape=jax.ShapeDtypeStruct((B, H, W, Cout), jnp.bfloat16),
        grid_spec=pltpu.PrefetchScalarGridSpec(
            num_scalar_prefetch=0,
            grid=(B,),
            in_specs=in_specs,
            out_specs=pl.BlockSpec((1, H, W, Cout), lambda b: (b, 0, 0, 0)),
        ),
        compiler_params=pltpu.CompilerParams(dimension_semantics=("parallel",)),
    )(*args)


def spatial_mean(x):
    """(B, HW, C) -> (B, 1, C) spatial mean (AdaptiveAvgPool2d(1))."""
    B, HW, C = x.shape
    return pl.pallas_call(
        functools.partial(_mean_kernel, inv=1.0 / HW),
        out_shape=jax.ShapeDtypeStruct((B, 1, C), jnp.float32),
    )(x)


def dwconv3x3_bn_silu(x, w9, scale, shift, stride):
    """Depthwise 3x3 + BN + SiLU; returns (activation bf16, per-channel spatial mean f32)."""
    B, H, W, C = x.shape
    xp = jnp.pad(x, ((0, 0), (1, 1), (1, 1), (0, 0)))
    y, pooled = pl.pallas_call(
        functools.partial(_dw3x3_kernel, H=H, W=W, inv_hw=1.0 / (H * W)),
        out_shape=(jax.ShapeDtypeStruct((B, H, W, C), jnp.bfloat16),
                   jax.ShapeDtypeStruct((B, 1, 1, C), jnp.float32)),
        grid_spec=pltpu.PrefetchScalarGridSpec(
            num_scalar_prefetch=0,
            grid=(B,),
            in_specs=[
                pl.BlockSpec((1, H + 2, W + 2, C), lambda b: (b, 0, 0, 0)),
                pl.BlockSpec((9, C), lambda b: (0, 0)),
                pl.BlockSpec((1, C), lambda b: (0, 0)),
                pl.BlockSpec((1, C), lambda b: (0, 0)),
            ],
            out_specs=(pl.BlockSpec((1, H, W, C), lambda b: (b, 0, 0, 0)),
                       pl.BlockSpec((1, 1, 1, C), lambda b: (b, 0, 0, 0))),
        ),
        compiler_params=pltpu.CompilerParams(dimension_semantics=("parallel",)),
    )(xp, w9, scale.reshape(1, C), shift.reshape(1, C))
    if stride == 2:
        # TODO(synk): only stage-4/6 first layers use stride-2 DW; compute at stride 1 and
        # subsample (valid k=3/pad=1/s=2 positions for even H,W); re-pool the subsampled map.
        y = y[:, ::2, ::2, :]
        B2, Ho, Wo, _ = y.shape
        pooled = spatial_mean(y.reshape(B, Ho * Wo, C))
    return y, pooled.reshape(B, C)


# ------------------------------ JAX glue ------------------------------------

def im2col(x, k, stride, pad):
    """(B,H,W,C) -> ((B*Ho*Wo, k*k*C), Ho, Wo); column order (di, dj, c) matches weights.
    Only used for the 3 stride-2 fused convs (stem + 2 downsample layers)."""
    B, H, W, C = x.shape
    xp = jnp.pad(x, ((0, 0), (pad, pad), (pad, pad), (0, 0)))
    Ho = (H + 2 * pad - k) // stride + 1
    Wo = (W + 2 * pad - k) // stride + 1
    cols = []
    for di in range(k):
        for dj in range(k):
            cols.append(xp[:, di:di + (Ho - 1) * stride + 1:stride,
                              dj:dj + (Wo - 1) * stride + 1:stride, :])
    a = jnp.concatenate(cols, axis=-1).reshape(B * Ho * Wo, k * k * C)
    return a, Ho, Wo


@functools.partial(jax.jit, static_argnames=("stride", "use_res", "expand_is_one"))
def fused_mbconv(p, x, *, stride, use_res, expand_is_one):
    B, H, W, Cin = x.shape
    if expand_is_one:
        # single 3x3 conv + BN + SiLU, residual fused in the conv epilogue
        return conv3x3_s1_bn_silu(x, p["w0"], p["s0"], p["b0"],
                                  residual=x if use_res else None)
    if stride == 1:
        h = conv3x3_s1_bn_silu(x, p["w0"], p["s0"], p["b0"])
        Ho, Wo = H, W
    else:
        a, Ho, Wo = im2col(x, 3, 2, 1)
        cexp = p["w0"].shape[-1]
        h = dense(a, p["w0"], p["s0"], p["b0"], act="silu").reshape(B, Ho, Wo, cexp)
    cexp = h.shape[-1]
    cout = p["w1"].shape[1]
    y = conv1x1(h.reshape(B, Ho * Wo, cexp), p["w1"], p["s1"], p["b1"], act="none",
                residual=x.reshape(B, H * W, Cin) if use_res else None)
    return y.reshape(B, Ho, Wo, cout)


@functools.partial(jax.jit, static_argnames=("stride", "use_res"))
def mbconv(p, x, *, stride, use_res):
    B, H, W, Cin = x.shape
    cexp = p["w_exp"].shape[1]
    # 1x1 expand + BN + SiLU
    h = conv1x1(x.reshape(B, H * W, Cin), p["w_exp"], p["s_exp"], p["b_exp"], act="silu")
    h = h.reshape(B, H, W, cexp)
    # depthwise 3x3 + BN + SiLU, SE average pool fused in the kernel
    h, pooled = dwconv3x3_bn_silu(h, p["w_dw"], p["s_dw"], p["b_dw"], stride)
    B2, Ho, Wo, _ = h.shape
    # Squeeze-and-Excitation (two tiny biased 1x1 convs)
    sq = p["se_w1"].shape[1]
    z = dense(pooled, p["se_w1"], jnp.ones((sq,), jnp.float32), p["se_b1"],
              act="silu", out_dtype=jnp.float32)
    gate = dense(z, p["se_w2"], jnp.ones((cexp,), jnp.float32), p["se_b2"],
                 act="sigmoid", out_dtype=jnp.float32)
    # 1x1 project + BN (no act), SE gate and residual fused in the GEMM epilogue
    cout = p["w_pr"].shape[1]
    y = conv1x1(h.reshape(B, Ho * Wo, cexp), p["w_pr"], p["s_pr"], p["b_pr"], act="none",
                gate=gate,
                residual=x.reshape(B, H * W, Cin) if use_res else None)
    return y.reshape(B, Ho, Wo, cout)


@jax.jit
def stem_apply(p, x):
    B, H, W, _ = x.shape
    a, Ho, Wo = im2col(x, 3, 2, 1)                     # 3x3 stride-2 stem conv (3 channels)
    y = dense(a, p["w"], p["s"], p["b"], act="silu")
    return y.reshape(B, Ho, Wo, y.shape[-1])


@jax.jit
def head_apply(p, fc_w, fc_b, x):
    B, H, W, C = x.shape
    y = conv1x1(x.reshape(B, H * W, C), p["w"], p["s"], p["b"], act="silu")   # 1x1 -> 1280
    pooled = spatial_mean(y)                                                  # (B,1,1280)
    # classifier: Dropout(0.3) is identity at inference; Linear(1280, NUM_CLASSES)
    logits = dense(pooled.reshape(B, LAST_CHANNEL), fc_w,
                   jnp.ones((fc_w.shape[1],), jnp.float32), fc_b,
                   act="none", out_dtype=jnp.float32)
    return logits[:, :NUM_CLASSES]


# --------------------------- parameter building -----------------------------

class KeyGen:
    def __init__(self, seed=0):
        self._base = jax.random.PRNGKey(seed)
        self._i = 0

    def __call__(self):
        self._i += 1
        return jax.random.fold_in(self._base, self._i)


def _rand(kg, shape, std):
    return std * jax.random.normal(kg(), shape)


def _pack2d(kg, kr, nr, kp, np_, std):
    """(kp, np_) bf16 weight with random (kr, nr) block, zero elsewhere (lane-dense N)."""
    w = jnp.zeros((kp, np_), jnp.float32).at[:kr, :nr].set(_rand(kg, (kr, nr), std))
    return w.astype(jnp.bfloat16)


def _pack_conv3(kg, cin_r, cout_r, cin_p, cout_p, std):
    w = jnp.zeros((9, cin_p, cout_p), jnp.float32)
    w = w.at[:, :cin_r, :cout_r].set(_rand(kg, (9, cin_r, cout_r), std))
    return w.astype(jnp.bfloat16)


def _pack_dw(kg, c_r, c_p, std):
    w = jnp.zeros((9, c_p), jnp.float32).at[:, :c_r].set(_rand(kg, (9, c_r), std))
    return w


def _fold_bn(kg, c_r, c_p):
    gamma = 1.0 + 0.1 * jax.random.normal(kg(), (c_r,))
    beta = 0.05 * jax.random.normal(kg(), (c_r,))
    mean = 0.05 * jax.random.normal(kg(), (c_r,))
    var = 1.0 + 0.1 * jax.random.uniform(kg(), (c_r,))
    scale = gamma / jnp.sqrt(var + BN_EPS)
    shift = beta - mean * scale
    s = jnp.zeros((c_p,), jnp.float32).at[:c_r].set(scale)   # padded channels -> exactly 0
    b = jnp.zeros((c_p,), jnp.float32).at[:c_r].set(shift)
    return s, b


def build_params():
    kg = KeyGen(0)
    params = {}

    # stem: 3 -> 24 (padded to 128), 3x3 stride 2, stored flattened for the im2col GEMM.
    c0p = pad128(24)
    w = jnp.zeros((9, 3, c0p), jnp.float32)
    w = w.at[:, :, :24].set(_rand(kg, (9, 3, 24), (1.0 / (9 * 3)) ** 0.5))
    params["stem"] = {"w": w.reshape(9 * 3, c0p).astype(jnp.bfloat16)}
    params["stem"]["s"], params["stem"]["b"] = _fold_bn(kg, 24, c0p)

    blocks = []
    for (btype, expand, _ksz, stride, cin, cout, layers) in V2M_CFG:
        for li in range(layers):
            in_c = cin if li == 0 else cout
            s = stride if li == 0 else 1
            use_res = (s == 1 and in_c == cout)
            gain = 0.25 if use_res else 1.0     # keep random-weight activations tame
            cin_p, cout_p = pad128(in_c), pad128(cout)
            cexp = in_c * expand
            cexp_p = pad128(cexp)
            if btype == "fused":
                if expand == 1:
                    p = {"w0": _pack_conv3(kg, in_c, cout, cin_p, cout_p,
                                           gain * (1.0 / (9 * in_c)) ** 0.5)}
                    p["s0"], p["b0"] = _fold_bn(kg, cout, cout_p)
                else:
                    w0 = _pack_conv3(kg, in_c, cexp, cin_p, cexp_p,
                                     (1.0 / (9 * in_c)) ** 0.5)
                    if s == 2:
                        w0 = w0.reshape(9 * cin_p, cexp_p)   # flat for im2col GEMM
                    p = {"w0": w0}
                    p["s0"], p["b0"] = _fold_bn(kg, cexp, cexp_p)
                    p["w1"] = _pack2d(kg, cexp, cout, cexp_p, cout_p,
                                      gain * (1.0 / cexp) ** 0.5)
                    p["s1"], p["b1"] = _fold_bn(kg, cout, cout_p)
                blocks.append((("fused", s, use_res, expand == 1), p))
            else:
                sq = max(1, in_c // 4)
                sq_p = pad128(sq)
                p = {"w_exp": _pack2d(kg, in_c, cexp, cin_p, cexp_p, (1.0 / in_c) ** 0.5)}
                p["s_exp"], p["b_exp"] = _fold_bn(kg, cexp, cexp_p)
                p["w_dw"] = _pack_dw(kg, cexp, cexp_p, (1.0 / 9.0) ** 0.5)
                p["s_dw"], p["b_dw"] = _fold_bn(kg, cexp, cexp_p)
                p["se_w1"] = _pack2d(kg, cexp, sq, cexp_p, sq_p, (1.0 / cexp) ** 0.5)
                p["se_b1"] = jnp.zeros((sq_p,), jnp.float32)
                p["se_w2"] = _pack2d(kg, sq, cexp, sq_p, cexp_p, (1.0 / sq) ** 0.5)
                p["se_b2"] = jnp.zeros((cexp_p,), jnp.float32)
                p["w_pr"] = _pack2d(kg, cexp, cout, cexp_p, cout_p,
                                    gain * (1.0 / cexp) ** 0.5)
                p["s_pr"], p["b_pr"] = _fold_bn(kg, cout, cout_p)
                blocks.append((("mb", s, use_res), p))
    params["blocks"] = blocks

    params["head"] = {"w": _pack2d(kg, 512, LAST_CHANNEL, 512, LAST_CHANNEL,
                                   (1.0 / 512) ** 0.5)}
    params["head"]["s"], params["head"]["b"] = _fold_bn(kg, LAST_CHANNEL, LAST_CHANNEL)
    params["fc_w"] = _pack2d(kg, LAST_CHANNEL, NUM_CLASSES, LAST_CHANNEL, 128,
                             (1.0 / LAST_CHANNEL) ** 0.5)
    params["fc_b"] = jnp.zeros((128,), jnp.float32)
    return params


def beetle_efficientnet_v2m_forward(params, x_nchw):
    """Input: NCHW float32 image batch (like the PyTorch module). Output: (B, 8) logits."""
    x = jnp.transpose(x_nchw, (0, 2, 3, 1)).astype(jnp.bfloat16)   # NCHW -> NHWC, bf16 features
    x = stem_apply(params["stem"], x)
    for meta, p in params["blocks"]:
        if meta[0] == "fused":
            _, s, use_res, e1 = meta
            x = fused_mbconv(p, x, stride=s, use_res=use_res, expand_is_one=e1)
        else:
            _, s, use_res = meta
            x = mbconv(p, x, stride=s, use_res=use_res)
    return head_apply(params["head"], params["fc_w"], params["fc_b"], x)


if __name__ == "__main__":
    params = build_params()
    # small but valid EfficientNet input (overall stride 32 -> final 2x2 feature map)
    x = jax.random.normal(jax.random.PRNGKey(0), (2, 3, 64, 64), dtype=jnp.float32)
    logits = beetle_efficientnet_v2m_forward(params, x)
    logits = jax.block_until_ready(logits)
    assert logits.shape == (2, NUM_CLASSES)
    assert bool(jnp.all(jnp.isfinite(logits)))
    print("KERNEL_OK")
</pallas_src>

<mosaic_0001>
module attributes {stable_mosaic.version = 11 : i64} {
  func.func @_dense_kernel(%arg0: i32, %arg1: memref<512x27xbf16, #tpu.memory_space<vmem>>, %arg2: memref<27x128xbf16, #tpu.memory_space<vmem>>, %arg3: memref<1x128xf32, #tpu.memory_space<vmem>>, %arg4: memref<1x128xf32, #tpu.memory_space<vmem>>, %arg5: memref<512x128xbf16, #tpu.memory_space<vmem>>) attributes {dimension_semantics = [#tpu.dimension_semantics<parallel>], iteration_bounds = array<i64: 4>, scalar_prefetch = 0 : i64, scratch_operands = 0 : i64, tpu.core_type = #tpu.core_type<tc>, window_params = [{transform_indices = @transform_0, window_bounds = array<i64: 512, 27>}, {pipeline_mode = #tpu.pipeline_mode<synchronous>, transform_indices = @transform_1, window_bounds = array<i64: 27, 128>}, {pipeline_mode = #tpu.pipeline_mode<synchronous>, transform_indices = @transform_2, window_bounds = array<i64: 1, 128>}, {pipeline_mode = #tpu.pipeline_mode<synchronous>, transform_indices = @transform_3, window_bounds = array<i64: 1, 128>}, {transform_indices = @transform_4, window_bounds = array<i64: 512, 128>}]} {
    %c0 = arith.constant 0 : index
    %c0_0 = arith.constant 0 : index
    %0 = vector.load %arg1[%c0, %c0_0] : memref<512x27xbf16, #tpu.memory_space<vmem>>, vector<512x27xbf16>
    %c0_1 = arith.constant 0 : index
    %c0_2 = arith.constant 0 : index
    %1 = vector.load %arg2[%c0_1, %c0_2] : memref<27x128xbf16, #tpu.memory_space<vmem>>, vector<27x128xbf16>
    %cst = arith.constant dense<0.000000e+00> : vector<512x128xf32>
    %2 = tpu.matmul %0, %1, %cst {dimension_numbers = #tpu.dot_dimension_numbers<[1], [0], [0], [1], [0, 0, 1, 1], [], []>} : vector<512x27xbf16>, vector<27x128xbf16>, vector<512x128xf32> -> vector<512x128xf32>
    %c0_3 = arith.constant 0 : index
    %c0_4 = arith.constant 0 : index
    %3 = vector.load %arg3[%c0_3, %c0_4] : memref<1x128xf32, #tpu.memory_space<vmem>>, vector<1x128xf32>
    %4 = vector.broadcast %3 : vector<1x128xf32> to vector<512x128xf32>
    %5 = arith.mulf %2, %4 : vector<512x128xf32>
    %c0_5 = arith.constant 0 : index
    %c0_6 = arith.constant 0 : index
    %6 = vector.load %arg4[%c0_5, %c0_6] : memref<1x128xf32, #tpu.memory_space<vmem>>, vector<1x128xf32>
    %7 = vector.broadcast %6 : vector<1x128xf32> to vector<512x128xf32>
    %8 = arith.addf %5, %7 : vector<512x128xf32>
    %cst_7 = arith.constant 0.000000e+00 : f32
    %9 = vector.broadcast %cst_7 : f32 to vector<512x128xf32>
    %10 = arith.subf %9, %8 : vector<512x128xf32>
    %11 = math.exp %10 : vector<512x128xf32>
    %cst_8 = arith.constant 1.000000e+00 : f32
    %12 = vector.broadcast %cst_8 : f32 to vector<512x128xf32>
    %13 = arith.addf %12, %11 : vector<512x128xf32>
    %14 = tpu.reciprocal %13 {approx = true} : vector<512x128xf32> -> vector<512x128xf32>
    %15 = arith.mulf %8, %14 : vector<512x128xf32>
    %16 = arith.truncf %15 : vector<512x128xf32> to vector<512x128xbf16>
    %c0_9 = arith.constant 0 : index
    %c0_10 = arith.constant 0 : index
    %17 = vector.load %arg5[%c0_9, %c0_10] : memref<512x128xbf16, #tpu.memory_space<vmem>>, vector<512x128xbf16>
    tpu.vector_store %arg5[%c0_9, %c0_10], %16 {strides = array<i32>} : memref<512x128xbf16, #tpu.memory_space<vmem>>, vector<512x128xbf16>,
    return
  }
  func.func @transform_0(%arg0: i32) -> (i32, i32) {
    %c0_i32 = arith.constant 0 : i32
    %c0_i32_0 = arith.constant 0 : i32
    return %arg0, %c0_i32 : i32, i32
  }
  func.func @transform_1(%arg0: i32) -> (i32, i32) {
    %c0_i32 = arith.constant 0 : i32
    %c0_i32_0 = arith.constant 0 : i32
    %c0_i32_1 = arith.constant 0 : i32
    return %c0_i32, %c0_i32_0 : i32, i32
  }
  func.func @transform_2(%arg0: i32) -> (i32, i32) {
    %c0_i32 = arith.constant 0 : i32
    %c0_i32_0 = arith.constant 0 : i32
    %c0_i32_1 = arith.constant 0 : i32
    return %c0_i32, %c0_i32_0 : i32, i32
  }
  func.func @transform_3(%arg0: i32) -> (i32, i32) {
    %c0_i32 = arith.constant 0 : i32
    %c0_i32_0 = arith.constant 0 : i32
    %c0_i32_1 = arith.constant 0 : i32
    return %c0_i32, %c0_i32_0 : i32, i32
  }
  func.func @transform_4(%arg0: i32) -> (i32, i32) {
    %c0_i32 = arith.constant 0 : i32
    %c0_i32_0 = arith.constant 0 : i32
    return %arg0, %c0_i32 : i32, i32
  }
}

</mosaic_0001>

<bundles_post_ra>
// kernel: stem_apply.1
= control target key start
LH: loop header
LB: loop body
LE: loop exit
PB: predicated region body
PF: predicated region fallthrough
CT: control target
= control target key end

     0   :  { %9 = vsyncpa [#allocation3], 0  ;;  %s2873_s0 = inlined_call_operand.vmem [shape: bf16[2048,27], index: 0, kind: input, shape index: {}]   ;;  %s2874_s1 = inlined_call_operand.vmem [shape: bf16[27,128], index: 1, kind: input, shape index: {}]   ;;  %s2875_s2 = inlined_call_operand.vmem [shape: f32[1,128], index: 2, kind: input, shape index: {}]   ;;  %s2876_s3 = inlined_call_operand.vmem [shape: f32[1,128], index: 3, kind: input, shape index: {}]   ;;  %s2877_s4 = inlined_call_operand.hbm [shape: bf16[2048,128], index: 4, kind: output, shape index: {}]  }
   0x1   :  { %11 = vsyncpa [#allocation3 + $0x1], 0  ;;  %s2244_s15 = smov 0   ;;  %s2246_s16 = smov 0  }
   0x2   :  { %s2248_s17 = smov 0   ;;  %s2250_s18 = smov 0  }
   0x3 LB: > { %s2265_s19 = sadd.s32 4294967295, %s2214_s18   ;;  %s1438_s20 = sadd.s32 4294967294, %s2214_s18   ;;  %s2214_s18 = sphi %s2250_s18, %s2883_s18   ;;  %s2210_s17 = sphi %s2248_s17, %s2882_s17   ;;  %s2206_s16 = sphi %s2246_s16, %s2881_s16   ;;  %s2202_s15 = sphi %s2244_s15, %s2880_s15  }
   0x4   : > { %s2269_s21 = sadd.s32 1, %s2214_s18   ;;  %s113_s22 = sadd.s32 1, %s2210_s17 }
   0x5   : > { %s110_s23 = ssub.s32 %s2214_s18, %s2269_s21  ;;  %p123_p0 = scmp.ne.s32.totalorder %s2210_s17, %s2206_s16 }
   0x6   : > { %p111_p1 = scmp.eq.s32.totalorder %s110_s23, 0  ;;  %p124_p2 = scmp.eq.s32.totalorder %s2265_s19, 3 }
   0x7   : > { %p129_p3 = scmp.ne.s32.totalorder %s2206_s16, %s2202_s15  ;;  %p130_p4 = scmp.eq.s32.totalorder %s1438_s20, 3 }
   0x8   : > { %s2280_s24 = scalar_select %p111_p1, %s2210_s17, %s113_s22  }
   0x9   : > { %p2282_p5 = por %p124_p2, %p123_p0  ;;  %p2286_p6 = por %p130_p4, %p129_p3 }
   0xa   : > { %p1441_p7 = scmp.ge.s32.totalorder %s2214_s18, 1  ;;  %p166_p8 = scmp.lt.s32.totalorder %s2214_s18, 5 }
   0xc   : > { %p167_p9 = pnand %p1441_p7, %p166_p8 }
   0xd   : > { %s1443_s5 = sshll.u32 (!%p167_p9), %s2265_s19, 6  ;;  %s189_s22 = sand.u32 (!%p167_p9), 1, %s2206_s16  }
   0xe   : > { %170 = sbr.rel (%p167_p9) target bundleno = 329 (0x149), region = 36  ;;  %p193_p10 = scmp.lt.s32.totalorder (!%p167_p9), %s1443_s5, 255 }
   0xf   : > { %s2463_s23 = sshll.u32 (!%p167_p9), %s189_s22, 8  ;;  %s1652_s6 = sshll.u32 (!%p167_p9), %s2265_s19, 8 }
  0x10   : > { %s2485_s27 = scalar_lea.vmem (!%p167_p9), [#allocation2], %s2463_s23  ;;  %s1372_s9 = scalar_lea.hbm (!%p167_p9), %s2877_s4, %s1652_s6 }
  0x11   : > { %s1373_s10 = sshll.u32 (!%p167_p9), %s2485_s27, 4  ;;  %s1375_s19 = sshll.u32 (!%p167_p9), %s1372_s9, 4  ;;  %s1374_s10 = int_to_ptr.vmem [resolvable:$true] %s1373_s10  ;;  %s1376_s19 = int_to_ptr.hbm [resolvable:$true] %s1375_s19 }
  0x12   : > { %s2166_s12 = sshra.s32 (!%p167_p9), %s1376_s19, 4  ;;  %s2172_s23 = scalar_lea.hbm (!%p167_p9), %s2877_s4, 1024  ;;  %s2167_s12 = int_to_ptr.hbm [resolvable:$true] %s2166_s12 }
  0x13   : > { %v1579_v0 = vld [vmem:[%s2874_s1 + $0x8] sm:$0xf]  ;;  %v1651_v1 = vld [vmem:[%s2874_s1 + $0x8] sm:$0x30]  ;;  %vm536_vm0 = vcmask 1044480   ;;  %vm537_vm1 = vcmask 1045504   ;;  %p2173_p0 = scmp.lt.s32.totalorder %s2167_s12, %s2877_s4 }
  0x14   : > { %v1580_v2 = vor.u32 %v1651_v1, %v1579_v0  ;;  %v2216_v3 = vmov 65535   ;;  %s2885_s5 = smov (!%p193_p10, %s1443_s5), 255  ;;  %v1650_v7 = vld [vmem:[%s2874_s1] sm:$0xff]  ;;  %vm439_vm2 = vcmask 220160   ;;  %s2168_s13 = scalar_lea.hbm %s2167_s12, 256 }
  0x15   : > { %v538_v4 = vsel %vm536_vm0, 4294967295, %v2216_v3  ;;  %s1444_s8 = sshll.u32 %s2885_s5, 2  ;;  %v2374_v40 = vld [vmem:[%s2875_s2] ss:$0 sm:$0xff]  ;;  %p2169_p11 = scmp.ne.s32.totalorder %s2167_s12, %s2168_s13 }
  0x16   : > { %v539_v5 = vsel %vm537_vm1, %v538_v4, 0  ;;  %s2305_s11 = scalar_lea.vmem %s2873_s0, %s1444_s8  ;;  %v2379_v41 = vld [vmem:[%s2876_s3] ss:$0 sm:$0xff]  ;;  %p2174_p1 = scmp.lt.s32.totalorder %s2172_s23, %s2168_s13 }
  0x17   : > { %v541_v6 = vand.u32 %v1580_v2, %v539_v5  ;;  %v1618_v8 = vld [vmem:[%s2305_s11] sm:$0xff]  ;;  %v1619_v12 = vld [vmem:[%s2305_s11 + $0x8] sm:$0xff]  ;;  %v1620_v16 = vld [vmem:[%s2305_s11 + $0x10] sm:$0xff]  ;;  %p2170_p12 = pnand %p2169_p11, %p2282_p5 }
  0x18   : > { %v1626_v9 = vld [vmem:[%s2305_s11 + $0x40] sm:$0xff]  ;;  %v1627_v13 = vld [vmem:[%s2305_s11 + $0x48] sm:$0xff]  ;;  %v1628_v17 = vld [vmem:[%s2305_s11 + $0x50] sm:$0xff]  ;;  %p2175_p2 = por %p2174_p1, %p2173_p0 }
  0x19   : > { %549 = vmatpush.bf16.msra.mxu0 %v541_v6  ;;  %1844 = vmatpush.bf16.msra.mxu1 %v541_v6  ;;  %v1634_v10 = vld [vmem:[%s2305_s11 + $0x80] sm:$0xff]  ;;  %v1635_v14 = vld [vmem:[%s2305_s11 + $0x88] sm:$0xff]  ;;  %v1636_v18 = vld [vmem:[%s2305_s11 + $0x90] sm:$0xff]  ;;  %p2171_p13 = pneg %p2170_p12 }
  0x1a   : > { %1845 = vmatpush.bf16.msra.mxu2 %v541_v6  ;;  %1846 = vmatpush.bf16.msra.mxu3 %v541_v6  ;;  %v1642_v11 = vld [vmem:[%s2305_s11 + $0xc0] sm:$0xff]  ;;  %v1643_v15 = vld [vmem:[%s2305_s11 + $0xc8] sm:$0xff]  ;;  %v1644_v19 = vld [vmem:[%s2305_s11 + $0xd0] sm:$0xff] }
  0x1b   : > { %v1621_v20 = vld [vmem:[%s2305_s11 + $0x18] sm:$0xff]  ;;  %v1622_v24 = vld [vmem:[%s2305_s11 + $0x20] sm:$0xff]  ;;  %v1623_v28 = vld [vmem:[%s2305_s11 + $0x28] sm:$0xff]  ;;  %p2176_p3 = pnand %p2175_p2, %p2171_p13 }
  0x1c   : > { %v1629_v21 = vld [vmem:[%s2305_s11 + $0x58] sm:$0xff]  ;;  %v1630_v25 = vld [vmem:[%s2305_s11 + $0x60] sm:$0xff]  ;;  %v1631_v29 = vld [vmem:[%s2305_s11 + $0x68] sm:$0xff] }
  0x1d   : > { %550 = vmatpush.bf16.msra.mxu0 %v1650_v7  ;;  %1847 = vmatpush.bf16.msra.mxu1 %v1650_v7  ;;  %v1637_v22 = vld [vmem:[%s2305_s11 + $0x98] sm:$0xff]  ;;  %v1638_v26 = vld [vmem:[%s2305_s11 + $0xa0] sm:$0xff]  ;;  %v1639_v30 = vld [vmem:[%s2305_s11 + $0xa8] sm:$0xff] }
  0x1e   : > { %1848 = vmatpush.bf16.msra.mxu2 %v1650_v7  ;;  %1849 = vmatpush.bf16.msra.mxu3 %v1650_v7  ;;  %v1645_v23 = vld [vmem:[%s2305_s11 + $0xd8] sm:$0xff]  ;;  %v1646_v27 = vld [vmem:[%s2305_s11 + $0xe0] sm:$0xff]  ;;  %v1647_v31 = vld [vmem:[%s2305_s11 + $0xe8] sm:$0xff] }
  0x1f   : > { %v1624_v32 = vld [vmem:[%s2305_s11 + $0x30] sm:$0xff]  ;;  %v1625_v36 = vld [vmem:[%s2305_s11 + $0x38] sm:$0xff] }
  0x20   : > { %1581 = vmatmul.msk.bf16.vlgmr.msra.gmra.mxu0 %vm439_vm2, %v1618_v8  ;;  %1589 = vmatmul.msk.bf16.vlgmr.msra.gmra.mxu1 %vm439_vm2, %v1626_v9  ;;  %v1632_v33 = vld [vmem:[%s2305_s11 + $0x70] sm:$0xff]  ;;  %v1633_v37 = vld [vmem:[%s2305_s11 + $0x78] sm:$0xff] }
  0x21   : > { %1597 = vmatmul.msk.bf16.vlgmr.msra.gmra.mxu2 %vm439_vm2, %v1634_v10  ;;  %1605 = vmatmul.msk.bf16.vlgmr.msra.gmra.mxu3 %vm439_vm2, %v1642_v11  ;;  %v1640_v34 = vld [vmem:[%s2305_s11 + $0xb0] sm:$0xff]  ;;  %v1641_v38 = vld [vmem:[%s2305_s11 + $0xb8] sm:$0xff] }
  0x22   : > { %v1648_v35 = vld [vmem:[%s2305_s11 + $0xf0] sm:$0xff]  ;;  %v1649_v39 = vld [vmem:[%s2305_s11 + $0xf8] sm:$0xff]  ;;  %s1361_s11 = scalar_lea.sflag [#allocation3], %s189_s22 }
  0x30   : > { %1582 = vmatmul.msk.bf16.gmra.mxu0 %vm439_vm2, %v1619_v12  ;;  %1590 = vmatmul.msk.bf16.gmra.mxu1 %vm439_vm2, %v1627_v13 }
  0x31   : > { %1598 = vmatmul.msk.bf16.gmra.mxu2 %vm439_vm2, %v1635_v14  ;;  %1606 = vmatmul.msk.bf16.gmra.mxu3 %vm439_vm2, %v1643_v15 }
  0x40   : > { %1583 = vmatmul.msk.bf16.gmra.mxu0 %vm439_vm2, %v1620_v16  ;;  %1591 = vmatmul.msk.bf16.gmra.mxu1 %vm439_vm2, %v1628_v17 }
  0x41   : > { %1599 = vmatmul.msk.bf16.gmra.mxu2 %vm439_vm2, %v1636_v18  ;;  %1607 = vmatmul.msk.bf16.gmra.mxu3 %vm439_vm2, %v1644_v19 }
  0x50   : > { %1584 = vmatmul.msk.bf16.gmra.mxu0 %vm439_vm2, %v1621_v20  ;;  %1592 = vmatmul.msk.bf16.gmra.mxu1 %vm439_vm2, %v1629_v21 }
  0x51   : > { %1600 = vmatmul.msk.bf16.gmra.mxu2 %vm439_vm2, %v1637_v22  ;;  %1608 = vmatmul.msk.bf16.gmra.mxu3 %vm439_vm2, %v1645_v23 }
  0x60   : > { %1585 = vmatmul.msk.bf16.gmra.mxu0 %vm439_vm2, %v1622_v24  ;;  %1593 = vmatmul.msk.bf16.gmra.mxu1 %vm439_vm2, %v1630_v25 }
  0x61   : > { %1601 = vmatmul.msk.bf16.gmra.mxu2 %vm439_vm2, %v1638_v26  ;;  %1609 = vmatmul.msk.bf16.gmra.mxu3 %vm439_vm2, %v1646_v27 }
  0x70   : > { %1586 = vmatmul.msk.bf16.gmra.mxu0 %vm439_vm2, %v1623_v28  ;;  %1594 = vmatmul.msk.bf16.gmra.mxu1 %vm439_vm2, %v1631_v29 }
  0x71   : > { %1602 = vmatmul.msk.bf16.gmra.mxu2 %vm439_vm2, %v1639_v30  ;;  %1610 = vmatmul.msk.bf16.gmra.mxu3 %vm439_vm2, %v1647_v31 }
  0x80   : > { %1587 = vmatmul.msk.bf16.gmra.mxu0 %vm439_vm2, %v1624_v32  ;;  %1595 = vmatmul.msk.bf16.gmra.mxu1 %vm439_vm2, %v1632_v33 }
  0x81   : > { %1603 = vmatmul.msk.bf16.gmra.mxu2 %vm439_vm2, %v1640_v34  ;;  %1611 = vmatmul.msk.bf16.gmra.mxu3 %vm439_vm2, %v1648_v35 }
  0x90   : > { %1588 = vmatmul.msk.bf16.gmra.mxu0 %vm439_vm2, %v1625_v36  ;;  %1596 = vmatmul.msk.bf16.gmra.mxu1 %vm439_vm2, %v1633_v37 }
  0x91   : > { %1604 = vmatmul.msk.bf16.gmra.mxu2 %vm439_vm2, %v1641_v38  ;;  %1612 = vmatmul.msk.bf16.gmra.mxu3 %vm439_vm2, %v1649_v39 }
  0x9d   : > { %v552_v42 = vpop.f32.mrf.mxu0  ;;  %v592_v43 = vpop.f32.mrf.mxu1 }
  0x9e   : > { %v716_v44 = vmul.f32 %v2374_v40, %v552_v42  ;;  %v732_v45 = vmul.f32 %v2374_v40, %v592_v43 }
  0xa0   : > { %v2384_v46 = vadd.f32 %v2379_v41, %v716_v44  ;;  %v2387_v47 = vadd.f32 %v2379_v41, %v732_v45 }
  0xa2   : > { %v848_v48 = vsub.f32 0.0, %v2384_v46  ;;  %v864_v49 = vsub.f32 0.0, %v2387_v47 }
  0xa4   : > { %v912_v50 = vmul.f32 1.442695, %v848_v48  ;;  %v944_v51 = vmul.f32 1.442695, %v864_v49  ;;  %v632_v52 = vpop.f32.mrf.mxu2  ;;  %v672_v53 = vpop.f32.mrf.mxu3 }
  0xa5   : > { %v748_v54 = vmul.f32 %v2374_v40, %v632_v52  ;;  %v764_v55 = vmul.f32 %v2374_v40, %v672_v53  ;;  %v554_v56 = vpop.f32.mrf.mxu0  ;;  %v594_v57 = vpop.f32.mrf.mxu1 }
  0xa6   : > { %1894 = vpow2.f32 %v912_v50  ;;  %v717_v58 = vmul.f32 %v2374_v40, %v554_v56  ;;  %v733_v59 = vmul.f32 %v2374_v40, %v594_v57 }
  0xa7   : > { %1896 = vpow2.f32 %v944_v51  ;;  %v2396_v60 = vadd.f32 %v2379_v41, %v748_v54  ;;  %v2399_v61 = vadd.f32 %v2379_v41, %v764_v55 }
  0xa8   : > { %v2402_v62 = vadd.f32 %v2379_v41, %v717_v58  ;;  %v2405_v63 = vadd.f32 %v2379_v41, %v733_v59 }
  0xa9   : > { %v880_v0 = vsub.f32 0.0, %v2396_v60  ;;  %v896_v1 = vsub.f32 0.0, %v2399_v61 }
  0xaa   : > { %v849_v2 = vsub.f32 0.0, %v2402_v62  ;;  %v865_v3 = vsub.f32 0.0, %v2405_v63 }
  0xab   : > { %v976_v4 = vmul.f32 1.442695, %v880_v0  ;;  %v1008_v5 = vmul.f32 1.442695, %v896_v1 }
  0xac   : > { %v1895_v6 = vpop.eup %1894  ;;  %v914_v7 = vmul.f32 1.442695, %v849_v2  ;;  %v634_v8 = vpop.f32.mrf.mxu2  ;;  %v946_v16 = vmul.f32 1.442695, %v865_v3 }
  0xad   : > { %v674_v9 = vpop.f32.mrf.mxu3  ;;  %v1897_v10 = vpop.eup %1896  ;;  %v1040_v11 = vadd.f32 1.0, %v1895_v6  ;;  %1898 = vpow2.f32 %v976_v4  ;;  %v749_v12 = vmul.f32 %v2374_v40, %v634_v8 }
  0xae   : > { %v765_v13 = vmul.f32 %v2374_v40, %v674_v9  ;;  %v557_v14 = vpop.f32.mrf.mxu0  ;;  %v597_v15 = vpop.f32.mrf.mxu1  ;;  %1900 = vpow2.f32 %v1008_v5  ;;  %v1056_v19 = vadd.f32 1.0, %v1897_v10 }
  0xaf   : > { %v718_v17 = vmul.f32 %v2374_v40, %v557_v14  ;;  %v734_v18 = vmul.f32 %v2374_v40, %v597_v15  ;;  %v2416_v20 = vadd.f32 %v2379_v41, %v749_v12  ;;  %1902 = vrcp.f32 %v1040_v11 }
  0xb0   : > { %v2419_v21 = vadd.f32 %v2379_v41, %v765_v13  ;;  %1904 = vpow2.f32 %v914_v7 }
  0xb1   : > { %v2422_v22 = vadd.f32 %v2379_v41, %v718_v17  ;;  %v2425_v23 = vadd.f32 %v2379_v41, %v734_v18  ;;  %v881_v24 = vsub.f32 0.0, %v2416_v20  ;;  %1906 = vpow2.f32 %v946_v16 }
  0xb2   : > { %v897_v25 = vsub.f32 0.0, %v2419_v21  ;;  %1908 = vrcp.f32 %v1056_v19 }
  0xb3   : > { %v850_v26 = vsub.f32 0.0, %v2422_v22  ;;  %v1899_v27 = vpop.eup %1898  ;;  %v978_v28 = vmul.f32 1.442695, %v881_v24  ;;  %v866_v29 = vsub.f32 0.0, %v2425_v23 }
  0xb4   : > { %v1901_v30 = vpop.eup %1900  ;;  %v1072_v31 = vadd.f32 1.0, %v1899_v27  ;;  %v1010_v32 = vmul.f32 1.442695, %v897_v25  ;;  %v637_v34 = vpop.f32.mrf.mxu2 }
  0xb5   : > { %v916_v33 = vmul.f32 1.442695, %v850_v26  ;;  %v677_v35 = vpop.f32.mrf.mxu3  ;;  %v1088_v36 = vadd.f32 1.0, %v1901_v30  ;;  %1910 = vpow2.f32 %v978_v28  ;;  %v750_v37 = vmul.f32 %v2374_v40, %v637_v34  ;;  %v1903_v43 = vpop.eup %1902 }
  0xb6   : > { %v766_v38 = vmul.f32 %v2374_v40, %v677_v35  ;;  %v559_v39 = vpop.f32.mrf.mxu0  ;;  %v599_v42 = vpop.f32.mrf.mxu1  ;;  %1912 = vrcp.f32 %v1072_v31  ;;  %v948_v49 = vmul.f32 1.442695, %v866_v29  ;;  %v1168_v3 = vmul.f32 %v1903_v43, %v2384_v46 }
  0xb7   : > { %v719_v44 = vmul.f32 %v2374_v40, %v559_v39  ;;  %v735_v45 = vmul.f32 %v2374_v40, %v599_v42  ;;  %v1905_v48 = vpop.eup %1904  ;;  %1914 = vrcp.f32 %v1088_v36  ;;  %v2436_v50 = vadd.f32 %v2379_v41, %v750_v37 }
  0xb8   : > { %v2439_v51 = vadd.f32 %v2379_v41, %v766_v38  ;;  %v1907_v52 = vpop.eup %1906  ;;  %v1041_v53 = vadd.f32 1.0, %v1905_v48  ;;  %1916 = vpow2.f32 %v1010_v32 }
  0xb9   : > { %v2442_v54 = vadd.f32 %v2379_v41, %v719_v44  ;;  %v2445_v55 = vadd.f32 %v2379_v41, %v735_v45  ;;  %v1909_v56 = vpop.eup %1908  ;;  %v1057_v57 = vadd.f32 1.0, %v1907_v52  ;;  %1918 = vpow2.f32 %v916_v33 }
  0xba   : > { %v882_v58 = vsub.f32 0.0, %v2436_v50  ;;  %v898_v59 = vsub.f32 0.0, %v2439_v51  ;;  %1920 = vrcp.f32 %v1041_v53  ;;  %v1184_v7 = vmul.f32 %v1909_v56, %v2387_v47 }
  0xbb   : > { %v851_v0 = vsub.f32 0.0, %v2442_v54  ;;  %v867_v1 = vsub.f32 0.0, %v2445_v55  ;;  %v1911_v2 = vpop.eup %1910  ;;  %1922 = vrcp.f32 %v1057_v57 }
  0xbc   : > { %v980_v4 = vmul.f32 1.442695, %v882_v58  ;;  %v1012_v5 = vmul.f32 1.442695, %v898_v59  ;;  %v1913_v6 = vpop.eup %1912  ;;  %v1073_v8 = vadd.f32 1.0, %v1911_v2  ;;  %1924 = vpow2.f32 %v948_v49  ;;  %v639_v10 = vpop.f32.mrf.mxu2 }
  0xbd   : > { %v918_v9 = vmul.f32 1.442695, %v851_v0  ;;  %v679_v11 = vpop.f32.mrf.mxu3  ;;  %v1915_v12 = vpop.eup %1914  ;;  %v950_v13 = vmul.f32 1.442695, %v867_v1  ;;  %v751_v14 = vmul.f32 %v2374_v40, %v639_v10  ;;  %v2457_v18 = vmul.f32 %v1913_v6, %v2396_v60 }
  0xbe   : > { %1926 = vpow2.f32 %v980_v4  ;;  %v767_v46 = vmul.f32 %v2374_v40, %v679_v11  ;;  %v562_v15 = vpop.f32.mrf.mxu0  ;;  %v602_v16 = vpop.f32.mrf.mxu1  ;;  %v1216_v36 = vmul.f32 %v1915_v12, %v2399_v61 }
  0xbf   : > { %v1917_v17 = vpop.eup %1916  ;;  %1928 = vrcp.f32 %v1073_v8  ;;  %v720_v47 = vmul.f32 %v2374_v40, %v562_v15  ;;  %v736_v19 = vmul.f32 %v2374_v40, %v602_v16  ;;  %v2466_v26 = vadd.f32 %v2379_v41, %v751_v14 }
  0xc0   : > { %v1919_v24 = vpop.eup %1918  ;;  %v1089_v25 = vadd.f32 1.0, %v1917_v17  ;;  %1930 = vpow2.f32 %v1012_v5  ;;  %v2469_v27 = vadd.f32 %v2379_v41, %v767_v46 }
  0xc1   : > { %v1921_v28 = vpop.eup %1920  ;;  %v1042_v60 = vadd.f32 1.0, %v1919_v24  ;;  %1932 = vpow2.f32 %v918_v9  ;;  %v2472_v29 = vadd.f32 %v2379_v41, %v720_v47  ;;  %v2475_v30 = vadd.f32 %v2379_v41, %v736_v19 }
  0xc2   : > { %v1923_v31 = vpop.eup %1922  ;;  %v1169_v32 = vmul.f32 %v1921_v28, %v2402_v62  ;;  %1934 = vrcp.f32 %v1089_v25  ;;  %v883_v33 = vsub.f32 0.0, %v2466_v26  ;;  %v899_v34 = vsub.f32 0.0, %v2469_v27 }
  0xc3   : > { %v1925_v35 = vpop.eup %1924  ;;  %v1185_v37 = vmul.f32 %v1923_v31, %v2405_v63  ;;  %1936 = vrcp.f32 %v1042_v60  ;;  %v852_v38 = vsub.f32 0.0, %v2472_v29  ;;  %v868_v52 = vsub.f32 0.0, %v2475_v30 }
  0xc4   : > { %v1927_v39 = vpop.eup %1926  ;;  %v1656_v42 = vpack.c.bf16 %v1169_v32, %v1168_v3  ;;  %v1058_v43 = vadd.f32 1.0, %v1925_v35  ;;  %1938 = vpow2.f32 %v950_v13  ;;  %v982_v44 = vmul.f32 1.442695, %v883_v33  ;;  %v642_v53 = vpop.f32.mrf.mxu2 }
  0xc5   : > { %v1929_v62 = vpop.eup %1928  ;;  %v1696_v45 = vpack.c.bf16 %v1185_v37, %v1184_v7  ;;  %v1074_v48 = vadd.f32 1.0, %v1927_v39  ;;  %v1014_v49 = vmul.f32 1.442695, %v899_v34  ;;  %v682_v56 = vpop.f32.mrf.mxu3  ;;  %v920_v57 = vmul.f32 1.442695, %v852_v38 }
  0xc6   : > { %v1931_v61 = vpop.eup %1930  ;;  %1657 = vst [vmem:[%s2485_s27] sm:$0xff] %v1656_v42   ;;  %v1201_v63 = vmul.f32 %v1929_v62, %v2416_v20  ;;  %1940 = vrcp.f32 %v1058_v43  ;;  %v752_v58 = vmul.f32 %v2374_v40, %v642_v53  ;;  %v564_v59 = vpop.f32.mrf.mxu0  ;;  %v768_v3 = vmul.f32 %v2374_v40, %v682_v56 }
  0xc7   : > { %v604_v0 = vpop.f32.mrf.mxu1  ;;  %v1933_v1 = vpop.eup %1932  ;;  %1820 = vst [vmem:[%s2485_s27 + $0x40] sm:$0xff] %v1696_v45   ;;  %1942 = vrcp.f32 %v1074_v48  ;;  %v1090_v2 = vadd.f32 1.0, %v1931_v61  ;;  %v721_v4 = vmul.f32 %v2374_v40, %v564_v59  ;;  %v952_v13 = vmul.f32 1.442695, %v868_v52 }
  0xc8   : > { %v1935_v5 = vpop.eup %1934  ;;  %v1736_v6 = vpack.c.bf16 %v1201_v63, %v2457_v18  ;;  %v1043_v7 = vadd.f32 1.0, %v1933_v1  ;;  %1944 = vpow2.f32 %v982_v44  ;;  %v2495_v20 = vadd.f32 %v2379_v41, %v752_v58 }
  0xc9   : > { %v1937_v8 = vpop.eup %1936  ;;  %v1217_v9 = vmul.f32 %v1935_v5, %v2419_v21  ;;  %1946 = vrcp.f32 %v1090_v2  ;;  %v2499_v10 = vadd.f32 %v2379_v41, %v768_v3  ;;  %v2502_v11 = vadd.f32 %v2379_v41, %v721_v4 }
  0xca   : > { %v1939_v12 = vpop.eup %1938  ;;  %1828 = vst [vmem:[%s2485_s27 + $0x80] sm:$0xff] %v1736_v6   ;;  %1948 = vrcp.f32 %v1043_v7  ;;  %v884_v14 = vsub.f32 0.0, %v2495_v20  ;;  %v737_v46 = vmul.f32 %v2374_v40, %v604_v0  ;;  %v1170_v25 = vmul.f32 %v1937_v8, %v2422_v22 }
  0xcb   : > { %v1776_v15 = vpack.c.bf16 %v1217_v9, %v1216_v36  ;;  %v1059_v16 = vadd.f32 1.0, %v1939_v12  ;;  %1950 = vpow2.f32 %v1014_v49  ;;  %v900_v21 = vsub.f32 0.0, %v2499_v10 }
  0xcc   : > { %v1941_v17 = vpop.eup %1940  ;;  %1952 = vpow2.f32 %v920_v57  ;;  %v984_v18 = vmul.f32 1.442695, %v884_v14  ;;  %v853_v47 = vsub.f32 0.0, %v2502_v11  ;;  %v2510_v19 = vadd.f32 %v2379_v41, %v737_v46  ;;  %v644_v31 = vpop.f32.mrf.mxu2 }
  0xcd   : > { %v1943_v24 = vpop.eup %1942  ;;  %1836 = vst [vmem:[%s2485_s27 + $0xc0] sm:$0xff] %v1776_v15   ;;  %v2515_v28 = vmul.f32 %v1941_v17, %v2425_v23  ;;  %1954 = vrcp.f32 %v1059_v16  ;;  %v1016_v60 = vmul.f32 1.442695, %v900_v21  ;;  %v684_v32 = vpop.f32.mrf.mxu3  ;;  %v753_v22 = vmul.f32 %v2374_v40, %v644_v31 }
  0xce   : > { %v1945_v33 = vpop.eup %1944  ;;  %v2518_v34 = vmul.f32 %v1943_v24, %v2436_v50  ;;  %1956 = vpow2.f32 %v952_v13  ;;  %v922_v35 = vmul.f32 1.442695, %v853_v47  ;;  %v869_v36 = vsub.f32 0.0, %v2510_v19  ;;  %v567_v37 = vpop.f32.mrf.mxu0 }
  0xcf   : > { %v607_v38 = vpop.f32.mrf.mxu1  ;;  %v1947_v39 = vpop.eup %1946  ;;  %v1075_v42 = vadd.f32 1.0, %v1945_v33  ;;  %1958 = vpow2.f32 %v984_v18  ;;  %v769_v23 = vmul.f32 %v2374_v40, %v684_v32  ;;  %v722_v62 = vmul.f32 %v2374_v40, %v567_v37 }
  0xd0   : > { %v1949_v43 = vpop.eup %1948  ;;  %v2524_v44 = vmul.f32 %v1947_v39, %v2439_v51  ;;  %1960 = vpow2.f32 %v1016_v60  ;;  %v954_v50 = vmul.f32 1.442695, %v869_v36  ;;  %v2529_v49 = vadd.f32 %v2379_v41, %v753_v22 }
  0xd1   : > { %v1951_v45 = vpop.eup %1950  ;;  %v1171_v48 = vmul.f32 %v1949_v43, %v2442_v54  ;;  %1962 = vrcp.f32 %v1075_v42  ;;  %v2532_v52 = vadd.f32 %v2379_v41, %v769_v23  ;;  %v2535_v51 = vadd.f32 %v2379_v41, %v722_v62 }
  0xd2   : > { %v1953_v53 = vpop.eup %1952  ;;  %v1091_v56 = vadd.f32 1.0, %v1951_v45  ;;  %1964 = vpow2.f32 %v922_v35  ;;  %v738_v61 = vmul.f32 %v2374_v40, %v607_v38  ;;  %v885_v54 = vsub.f32 0.0, %v2529_v49 }
  0xd3   : > { %v1955_v63 = vpop.eup %1954  ;;  %v1661_v57 = vpack.c.bf16 %v1171_v48, %v1170_v25  ;;  %v1044_v58 = vadd.f32 1.0, %v1953_v53  ;;  %1966 = vpow2.f32 %v954_v50  ;;  %v901_v1 = vsub.f32 0.0, %v2532_v52 }
  0xd4   : > { %v1957_v59 = vpop.eup %1956  ;;  %v1187_v0 = vmul.f32 %v1955_v63, %v2445_v55  ;;  %1968 = vrcp.f32 %v1091_v56  ;;  %v854_v2 = vsub.f32 0.0, %v2535_v51  ;;  %v986_v5 = vmul.f32 1.442695, %v885_v54  ;;  %v647_v7 = vpop.f32.mrf.mxu2 }
  0xd5   : > { %v1959_v3 = vpop.eup %1958  ;;  %1813 = vst [vmem:[%s2485_s27 + $0x8] sm:$0xff] %v1661_v57   ;;  %1970 = vrcp.f32 %v1044_v58  ;;  %v1060_v4 = vadd.f32 1.0, %v1957_v59  ;;  %v2544_v6 = vadd.f32 %v2379_v41, %v738_v61  ;;  %v687_v8 = vpop.f32.mrf.mxu3  ;;  %v1018_v13 = vmul.f32 1.442695, %v901_v1 }
  0xd6   : > { %v1961_v9 = vpop.eup %1960  ;;  %v1701_v12 = vpack.c.bf16 %v1187_v0, %v2515_v28  ;;  %v1076_v55 = vadd.f32 1.0, %v1959_v3  ;;  %v924_v14 = vmul.f32 1.442695, %v854_v2  ;;  %v569_v46 = vpop.f32.mrf.mxu0  ;;  %v754_v18 = vmul.f32 %v2374_v40, %v647_v7 }
  0xd7   : > { %v609_v15 = vpop.f32.mrf.mxu1  ;;  %v1963_v16 = vpop.eup %1962  ;;  %1972 = vrcp.f32 %v1060_v4  ;;  %v1092_v21 = vadd.f32 1.0, %v1961_v9  ;;  %v870_v17 = vsub.f32 0.0, %v2544_v6  ;;  %v770_v25 = vmul.f32 %v2374_v40, %v687_v8 }
  0xd8   : > { %v1965_v47 = vpop.eup %1964  ;;  %1821 = vst [vmem:[%s2485_s27 + $0x48] sm:$0xff] %v1701_v12   ;;  %v1203_v24 = vmul.f32 %v1963_v16, %v2466_v26  ;;  %1974 = vrcp.f32 %v1076_v55  ;;  %v723_v28 = vmul.f32 %v2374_v40, %v569_v46  ;;  %v2554_v33 = vadd.f32 %v2379_v41, %v754_v18 }
  0xd9   : > { %v1967_v60 = vpop.eup %1966  ;;  %1976 = vrcp.f32 %v1092_v21  ;;  %v1045_v31 = vadd.f32 1.0, %v1965_v47  ;;  %v956_v32 = vmul.f32 1.442695, %v870_v17  ;;  %v2558_v26 = vadd.f32 %v2379_v41, %v770_v25 }
  0xda   : > { %v1969_v35 = vpop.eup %1968  ;;  %v1741_v36 = vpack.c.bf16 %v1203_v24, %v2518_v34  ;;  %v1061_v37 = vadd.f32 1.0, %v1967_v60  ;;  %1978 = vpow2.f32 %v986_v5  ;;  %v886_v42 = vsub.f32 0.0, %v2554_v33 }
  0xdb   : > { %v1971_v38 = vpop.eup %1970  ;;  %v1219_v39 = vmul.f32 %v1969_v35, %v2469_v27  ;;  %1980 = vrcp.f32 %v1045_v31  ;;  %v2563_v22 = vadd.f32 %v2379_v41, %v723_v28  ;;  %v902_v34 = vsub.f32 0.0, %v2558_v26 }
  0xdc   : > { %1829 = vst [vmem:[%s2485_s27 + $0x88] sm:$0xff] %v1741_v36   ;;  %v1172_v23 = vmul.f32 %v1971_v38, %v2472_v29  ;;  %1982 = vrcp.f32 %v1061_v37  ;;  %v739_v43 = vmul.f32 %v2374_v40, %v609_v15  ;;  %v988_v27 = vmul.f32 1.442695, %v886_v42  ;;  %v649_v48 = vpop.f32.mrf.mxu2 }
  0xdd   : > { %v1973_v50 = vpop.eup %1972  ;;  %v1781_v62 = vpack.c.bf16 %v1219_v39, %v2524_v44  ;;  %1984 = vpow2.f32 %v1018_v13  ;;  %v855_v45 = vsub.f32 0.0, %v2563_v22  ;;  %v689_v53 = vpop.f32.mrf.mxu3  ;;  %v1020_v29 = vmul.f32 1.442695, %v902_v34 }
  0xde   : > { %v1975_v56 = vpop.eup %1974  ;;  %v1188_v61 = vmul.f32 %v1973_v50, %v2475_v30  ;;  %1986 = vpow2.f32 %v924_v14  ;;  %v2573_v63 = vadd.f32 %v2379_v41, %v739_v43  ;;  %v572_v57 = vpop.f32.mrf.mxu0  ;;  %v755_v0 = vmul.f32 %v2374_v40, %v649_v48 }
  0xdf   : > { %v612_v58 = vpop.f32.mrf.mxu1  ;;  %v1977_v54 = vpop.eup %1976  ;;  %1837 = vst [vmem:[%s2485_s27 + $0xc8] sm:$0xff] %v1781_v62   ;;  %v2577_v44 = vmul.f32 %v1975_v56, %v2495_v20  ;;  %1988 = vpow2.f32 %v956_v32  ;;  %v926_v59 = vmul.f32 1.442695, %v855_v45  ;;  %v771_v3 = vmul.f32 %v2374_v40, %v689_v53 }
  0xe0   : > { %v1979_v1 = vpop.eup %1978  ;;  %v2581_v2 = vmul.f32 %v1977_v54, %v2499_v10  ;;  %1990 = vpow2.f32 %v988_v27  ;;  %v871_v30 = vsub.f32 0.0, %v2573_v63  ;;  %v2586_v7 = vadd.f32 %v2379_v41, %v755_v0 }
  0xe1   : > { %v1981_v4 = vpop.eup %1980  ;;  %v1077_v5 = vadd.f32 1.0, %v1979_v1  ;;  %1992 = vpow2.f32 %v1020_v29  ;;  %v724_v20 = vmul.f32 %v2374_v40, %v572_v57  ;;  %v2591_v10 = vadd.f32 %v2379_v41, %v771_v3 }
  0xe2   : > { %v1983_v8 = vpop.eup %1982  ;;  %v1173_v9 = vmul.f32 %v1981_v4, %v2502_v11  ;;  %1994 = vpow2.f32 %v926_v59  ;;  %v958_v12 = vmul.f32 1.442695, %v871_v30  ;;  %v887_v14 = vsub.f32 0.0, %v2586_v7 }
  0xe3   : > { %v1985_v55 = vpop.eup %1984  ;;  %v1189_v13 = vmul.f32 %v1983_v8, %v2510_v19  ;;  %1996 = vrcp.f32 %v1077_v5  ;;  %v2596_v46 = vadd.f32 %v2379_v41, %v724_v20  ;;  %v903_v11 = vsub.f32 0.0, %v2591_v10 }
  0xe4   : > { %v1987_v15 = vpop.eup %1986  ;;  %v1666_v16 = vpack.c.bf16 %v1173_v9, %v1172_v23  ;;  %v1093_v21 = vadd.f32 1.0, %v1985_v55  ;;  %1998 = vpow2.f32 %v958_v12  ;;  %v990_v24 = vmul.f32 1.442695, %v887_v14  ;;  %v652_v25 = vpop.f32.mrf.mxu2 }
  0xe5   : > { %v1989_v17 = vpop.eup %1988  ;;  %v1706_v18 = vpack.c.bf16 %v1189_v13, %v1188_v61  ;;  %v1046_v47 = vadd.f32 1.0, %v1987_v15  ;;  %v856_v19 = vsub.f32 0.0, %v2596_v46  ;;  %v692_v28 = vpop.f32.mrf.mxu3  ;;  %v1022_v32 = vmul.f32 1.442695, %v903_v11 }
  0xe6   : > { %v1991_v60 = vpop.eup %1990  ;;  %1814 = vst [vmem:[%s2485_s27 + $0x10] sm:$0xff] %v1666_v16   ;;  %2000 = vrcp.f32 %v1093_v21  ;;  %v1062_v31 = vadd.f32 1.0, %v1989_v17  ;;  %v740_v35 = vmul.f32 %v2374_v40, %v612_v58  ;;  %v574_v36 = vpop.f32.mrf.mxu0  ;;  %v756_v23 = vmul.f32 %v2374_v40, %v652_v25 }
  0xe7   : > { %v614_v37 = vpop.f32.mrf.mxu1  ;;  %v1993_v38 = vpop.eup %1992  ;;  %1822 = vst [vmem:[%s2485_s27 + $0x50] sm:$0xff] %v1706_v18   ;;  %2002 = vrcp.f32 %v1046_v47  ;;  %v1078_v39 = vadd.f32 1.0, %v1991_v60  ;;  %v928_v42 = vmul.f32 1.442695, %v856_v19  ;;  %v772_v62 = vmul.f32 %v2374_v40, %v692_v28 }
  0xe8   : > { %v1995_v34 = vpop.eup %1994  ;;  %2004 = vrcp.f32 %v1062_v31  ;;  %v1094_v43 = vadd.f32 1.0, %v1993_v38  ;;  %v2605_v50 = vadd.f32 %v2379_v41, %v740_v35  ;;  %v2609_v48 = vadd.f32 %v2379_v41, %v756_v23 }
  0xe9   : > { %v1997_v27 = vpop.eup %1996  ;;  %2006 = vrcp.f32 %v1078_v39  ;;  %v1047_v45 = vadd.f32 1.0, %v1995_v34  ;;  %v725_v53 = vmul.f32 %v2374_v40, %v574_v36  ;;  %v2615_v57 = vadd.f32 %v2379_v41, %v772_v62 }
  0xea   : > { %v1999_v56 = vpop.eup %1998  ;;  %v1205_v61 = vmul.f32 %v1997_v27, %v2529_v49  ;;  %2008 = vrcp.f32 %v1094_v43  ;;  %v872_v29 = vsub.f32 0.0, %v2605_v50  ;;  %v888_v54 = vsub.f32 0.0, %v2609_v48 }
  0xeb   : > { %2010 = vrcp.f32 %v1047_v45  ;;  %v1063_v58 = vadd.f32 1.0, %v1999_v56  ;;  %v2619_v59 = vadd.f32 %v2379_v41, %v725_v53  ;;  %v904_v49 = vsub.f32 0.0, %v2615_v57 }
  0xec   : > { %v2001_v0 = vpop.eup %2000  ;;  %v1746_v1 = vpack.c.bf16 %v1205_v61, %v2577_v44  ;;  %2012 = vpow2.f32 %v990_v24  ;;  %v960_v30 = vmul.f32 1.442695, %v872_v29  ;;  %v992_v5 = vmul.f32 1.442695, %v888_v54  ;;  %v654_v8 = vpop.f32.mrf.mxu2 }
  0xed   : > { %v2003_v3 = vpop.eup %2002  ;;  %v1221_v4 = vmul.f32 %v2001_v0, %v2532_v52  ;;  %2014 = vrcp.f32 %v1063_v58  ;;  %v857_v20 = vsub.f32 0.0, %v2619_v59  ;;  %v694_v9 = vpop.f32.mrf.mxu3  ;;  %v1024_v44 = vmul.f32 1.442695, %v904_v49 }
  0xee   : > { %v2005_v12 = vpop.eup %2004  ;;  %1830 = vst [vmem:[%s2485_s27 + $0x90] sm:$0xff] %v1746_v1   ;;  %v1174_v55 = vmul.f32 %v2003_v3, %v2535_v51  ;;  %2016 = vpow2.f32 %v1022_v32  ;;  %v741_v13 = vmul.f32 %v2374_v40, %v614_v37  ;;  %v577_v14 = vpop.f32.mrf.mxu0  ;;  %v757_v47 = vmul.f32 %v2374_v40, %v654_v8 }
  0xef   : > { %v617_v15 = vpop.f32.mrf.mxu1  ;;  %v2007_v16 = vpop.eup %2006  ;;  %v1786_v52 = vpack.c.bf16 %v1221_v4, %v2581_v2  ;;  %v1190_v21 = vmul.f32 %v2005_v12, %v2544_v6  ;;  %2018 = vpow2.f32 %v928_v42  ;;  %v930_v11 = vmul.f32 1.442695, %v857_v20 }
  0xf0   : > { %v2009_v17 = vpop.eup %2008  ;;  %v2631_v18 = vmul.f32 %v2007_v16, %v2554_v33  ;;  %2020 = vpow2.f32 %v960_v30  ;;  %v2634_v51 = vadd.f32 %v2379_v41, %v741_v13  ;;  %v773_v6 = vmul.f32 %v2374_v40, %v694_v9 }
  0xf1   : > { %v2011_v24 = vpop.eup %2010  ;;  %1838 = vst [vmem:[%s2485_s27 + $0xd0] sm:$0xff] %v1786_v52   ;;  %v2639_v19 = vmul.f32 %v2009_v17, %v2558_v26  ;;  %2022 = vpow2.f32 %v992_v5  ;;  %v726_v2 = vmul.f32 %v2374_v40, %v577_v14  ;;  %v2646_v60 = vadd.f32 %v2379_v41, %v757_v47 }
  0xf2   : > { %v2013_v25 = vpop.eup %2012  ;;  %v1175_v33 = vmul.f32 %v2011_v24, %v2563_v22  ;;  %2024 = vpow2.f32 %v1024_v44  ;;  %v873_v28 = vsub.f32 0.0, %v2634_v51  ;;  %v2649_v26 = vadd.f32 %v2379_v41, %v773_v6 }
  0xf3   : > { %v2015_v31 = vpop.eup %2014  ;;  %v1079_v32 = vadd.f32 1.0, %v2013_v25  ;;  %2026 = vpow2.f32 %v930_v11  ;;  %v2652_v35 = vadd.f32 %v2379_v41, %v726_v2  ;;  %v889_v39 = vsub.f32 0.0, %v2646_v60 }
  0xf4   : > { %v2017_v36 = vpop.eup %2016  ;;  %v1671_v37 = vpack.c.bf16 %v1175_v33, %v1174_v55  ;;  %v1191_v22 = vmul.f32 %v2015_v31, %v2573_v63  ;;  %v962_v38 = vmul.f32 1.442695, %v873_v28  ;;  %v905_v34 = vsub.f32 0.0, %v2649_v26  ;;  %v657_v62 = vpop.f32.mrf.mxu2 }
  0xf5   : > { %v2019_v42 = vpop.eup %2018  ;;  %2028 = vrcp.f32 %v1079_v32  ;;  %v1095_v23 = vadd.f32 1.0, %v2017_v36  ;;  %v858_v43 = vsub.f32 0.0, %v2652_v35  ;;  %v697_v27 = vpop.f32.mrf.mxu3  ;;  %v994_v61 = vmul.f32 1.442695, %v889_v39 }
  0xf6   : > { %v2021_v45 = vpop.eup %2020  ;;  %1815 = vst [vmem:[%s2485_s27 + $0x18] sm:$0xff] %v1671_v37   ;;  %v1711_v53 = vpack.c.bf16 %v1191_v22, %v1190_v21  ;;  %v1048_v56 = vadd.f32 1.0, %v2019_v42  ;;  %2030 = vpow2.f32 %v962_v38  ;;  %v579_v63 = vpop.f32.mrf.mxu0  ;;  %v1026_v0 = vmul.f32 1.442695, %v905_v34 }
  0xf7   : > { %v619_v29 = vpop.f32.mrf.mxu1  ;;  %v2023_v58 = vpop.eup %2022  ;;  %2032 = vrcp.f32 %v1095_v23  ;;  %v1064_v54 = vadd.f32 1.0, %v2021_v45  ;;  %v932_v1 = vmul.f32 1.442695, %v858_v43  ;;  %v742_v3 = vmul.f32 %v2374_v40, %v617_v15 }
  0xf8   : > { %v2025_v30 = vpop.eup %2024  ;;  %1823 = vst [vmem:[%s2485_s27 + $0x58] sm:$0xff] %v1711_v53   ;;  %2034 = vrcp.f32 %v1048_v56  ;;  %v1080_v49 = vadd.f32 1.0, %v2023_v58  ;;  %v758_v4 = vmul.f32 %v2374_v40, %v657_v62  ;;  %v774_v8 = vmul.f32 %v2374_v40, %v697_v27 }
  0xf9   : > { %v2027_v5 = vpop.eup %2026  ;;  %2036 = vrcp.f32 %v1064_v54  ;;  %v1096_v20 = vadd.f32 1.0, %v2025_v30  ;;  %v727_v9 = vmul.f32 %v2374_v40, %v579_v63  ;;  %v2665_v55 = vadd.f32 %v2379_v41, %v742_v3 }
  0xfa   : > { %2038 = vrcp.f32 %v1080_v49  ;;  %v1049_v12 = vadd.f32 1.0, %v2027_v5  ;;  %v2668_v44 = vadd.f32 %v2379_v41, %v758_v4  ;;  %v2671_v14 = vadd.f32 %v2379_v41, %v774_v8 }
  0xfb   : > { %v2029_v13 = vpop.eup %2028  ;;  %2040 = vrcp.f32 %v1096_v20  ;;  %v2674_v15 = vadd.f32 %v2379_v41, %v727_v9  ;;  %v743_v16 = vmul.f32 %v2374_v40, %v619_v29  ;;  %v874_v11 = vsub.f32 0.0, %v2665_v55 }
  0xfc   : > { %v2031_v52 = vpop.eup %2030  ;;  %v1207_v21 = vmul.f32 %v2029_v13, %v2586_v7  ;;  %2042 = vrcp.f32 %v1049_v12  ;;  %v890_v17 = vsub.f32 0.0, %v2668_v44  ;;  %v906_v6 = vsub.f32 0.0, %v2671_v14  ;;  %v659_v25 = vpop.f32.mrf.mxu2 }
  0xfd   : > { %v2033_v47 = vpop.eup %2032  ;;  %v1065_v24 = vadd.f32 1.0, %v2031_v52  ;;  %2044 = vpow2.f32 %v994_v61  ;;  %v859_v2 = vsub.f32 0.0, %v2674_v15  ;;  %v699_v33 = vpop.f32.mrf.mxu3  ;;  %v964_v32 = vmul.f32 1.442695, %v874_v11 }
  0xfe   : > { %v2035_v28 = vpop.eup %2034  ;;  %v1751_v31 = vpack.c.bf16 %v1207_v21, %v2631_v18  ;;  %v1223_v7 = vmul.f32 %v2033_v47, %v2591_v10  ;;  %2046 = vpow2.f32 %v1026_v0  ;;  %v582_v36 = vpop.f32.mrf.mxu0  ;;  %v996_v38 = vmul.f32 1.442695, %v890_v17 }
  0xff   : > { %v622_v37 = vpop.f32.mrf.mxu1  ;;  %v2037_v22 = vpop.eup %2036  ;;  %2048 = vrcp.f32 %v1065_v24  ;;  %v1028_v39 = vmul.f32 1.442695, %v906_v6  ;;  %v934_v34 = vmul.f32 1.442695, %v859_v2  ;;  %v1176_v18 = vmul.f32 %v2035_v28, %v2596_v46 }
 0x100   : > { %v2039_v42 = vpop.eup %2038  ;;  %1831 = vst [vmem:[%s2485_s27 + $0x98] sm:$0xff] %v1751_v31   ;;  %v1791_v23 = vpack.c.bf16 %v1223_v7, %v2639_v19  ;;  %2050 = vpow2.f32 %v932_v1  ;;  %v2688_v10 = vadd.f32 %v2379_v41, %v743_v16  ;;  %v759_v62 = vmul.f32 %v2374_v40, %v659_v25  ;;  %v2715_v16 = vld [vmem:[%s2875_s2] ss:$0 sm:$0xff] }
 0x101   : > { %v2041_v43 = vpop.eup %2040  ;;  %2052 = vpow2.f32 %v964_v32  ;;  %v1192_v45 = vmul.f32 %v2037_v22, %v2605_v50  ;;  %v775_v53 = vmul.f32 %v2374_v40, %v699_v33  ;;  %v728_v19 = vmul.f32 %v2374_v40, %v582_v36  ;;  %v2722_v25 = vld [vmem:[%s2876_s3] ss:$0 sm:$0xff] }
 0x102   : > { %v2043_v27 = vpop.eup %2042  ;;  %1839 = vst [vmem:[%s2485_s27 + $0xd8] sm:$0xff] %v1791_v23   ;;  %2054 = vpow2.f32 %v996_v38  ;;  %v875_v46 = vsub.f32 0.0, %v2688_v10  ;;  %v2698_v63 = vadd.f32 %v2379_v41, %v759_v62  ;;  %v1208_v12 = vmul.f32 %v2039_v42, %v2609_v48 }
 0x103   : > { %v2045_v56 = vpop.eup %2044  ;;  %v1177_v61 = vmul.f32 %v2043_v27, %v2619_v59  ;;  %2056 = vpow2.f32 %v1028_v39  ;;  %v2701_v54 = vadd.f32 %v2379_v41, %v775_v53  ;;  %v2704_v50 = vadd.f32 %v2379_v41, %v728_v19 }
 0x104   : > { %v2047_v29 = vpop.eup %2046  ;;  %v1081_v58 = vadd.f32 1.0, %v2045_v56  ;;  %2058 = vpow2.f32 %v934_v34  ;;  %v966_v59 = vmul.f32 1.442695, %v875_v46  ;;  %v891_v30 = vsub.f32 0.0, %v2698_v63  ;;  %v662_v49 = vpop.f32.mrf.mxu2 }
 0x105   : > { %v2049_v40 = vpop.eup %2048  ;;  %v1676_v0 = vpack.c.bf16 %v1177_v61, %v1176_v18  ;;  %v1097_v1 = vadd.f32 1.0, %v2047_v29  ;;  %v702_v3 = vpop.f32.mrf.mxu3  ;;  %v907_v20 = vsub.f32 0.0, %v2701_v54  ;;  %v860_v8 = vsub.f32 0.0, %v2704_v50 }
 0x106   : > { %v2051_v4 = vpop.eup %2050  ;;  %v1193_v5 = vmul.f32 %v2049_v40, %v2634_v51  ;;  %2060 = vrcp.f32 %v1081_v58  ;;  %v584_v9 = vpop.f32.mrf.mxu0  ;;  %v744_v51 = vmul.f32 %v2715_v16, %v622_v37  ;;  %v1224_v21 = vmul.f32 %v2041_v43, %v2615_v57 }
 0x107   : > { %v2053_v41 = vpop.eup %2052  ;;  %1816 = vst [vmem:[%s2485_s27 + $0x20] sm:$0xff] %v1676_v0   ;;  %2062 = vrcp.f32 %v1097_v1  ;;  %v1050_v13 = vadd.f32 1.0, %v2051_v4  ;;  %v624_v47 = vpop.f32.mrf.mxu1  ;;  %v998_v6 = vmul.f32 1.442695, %v891_v30  ;;  %v1030_v2 = vmul.f32 1.442695, %v907_v20 }
 0x108   : > { %v2055_v52 = vpop.eup %2054  ;;  %v1716_v11 = vpack.c.bf16 %v1193_v5, %v1192_v45  ;;  %v1066_v17 = vadd.f32 1.0, %v2053_v41  ;;  %2064 = vpow2.f32 %v966_v59  ;;  %v2725_v33 = vadd.f32 %v2722_v25, %v744_v51 }
 0x109   : > { %v2057_v24 = vpop.eup %2056  ;;  %v1082_v48 = vadd.f32 1.0, %v2055_v52  ;;  %2066 = vrcp.f32 %v1050_v13  ;;  %v936_v57 = vmul.f32 1.442695, %v860_v8  ;;  %v760_v31 = vmul.f32 %v2715_v16, %v662_v49 }
 0x10a   : > { %v2059_v28 = vpop.eup %2058  ;;  %1824 = vst [vmem:[%s2485_s27 + $0x60] sm:$0xff] %v1716_v11   ;;  %v776_v7 = vmul.f32 %v2715_v16, %v702_v3  ;;  %2068 = vrcp.f32 %v1066_v17  ;;  %v876_v36 = vsub.f32 0.0, %v2725_v33  ;;  %v729_v37 = vmul.f32 %v2715_v16, %v584_v9 }
 0x10b   : > { %v1051_v32 = vadd.f32 1.0, %v2059_v28  ;;  %2070 = vrcp.f32 %v1082_v48  ;;  %v1098_v38 = vadd.f32 1.0, %v2057_v24  ;;  %v2733_v39 = vadd.f32 %v2722_v25, %v760_v31 }
 0x10c   : > { %v2061_v22 = vpop.eup %2060  ;;  %v2736_v42 = vadd.f32 %v2722_v25, %v776_v7  ;;  %v2740_v43 = vadd.f32 %v2722_v25, %v729_v37  ;;  %v745_v18 = vmul.f32 %v2715_v16, %v624_v47  ;;  %v664_v62 = vpop.f32.mrf.mxu2  ;;  %v968_v19 = vmul.f32 1.442695, %v876_v36 }
 0x10d   : > { %v2063_v23 = vpop.eup %2062  ;;  %v1209_v34 = vmul.f32 %v2061_v22, %v2646_v60  ;;  %2072 = vrcp.f32 %v1051_v32  ;;  %v704_v27 = vpop.f32.mrf.mxu3  ;;  %v892_v56 = vsub.f32 0.0, %v2733_v39  ;;  %v761_v3 = vmul.f32 %v2715_v16, %v664_v62 }
 0x10e   : > { %v2065_v45 = vpop.eup %2064  ;;  %v1225_v53 = vmul.f32 %v2063_v23, %v2649_v26  ;;  %2074 = vpow2.f32 %v998_v6  ;;  %v861_v60 = vsub.f32 0.0, %v2740_v43  ;;  %v587_v29 = vpop.f32.mrf.mxu0  ;;  %v908_v0 = vsub.f32 0.0, %v2736_v42 }
 0x10f   : > { %v1756_v61 = vpack.c.bf16 %v1209_v34, %v1208_v12  ;;  %v1067_v46 = vadd.f32 1.0, %v2065_v45  ;;  %2076 = vpow2.f32 %v1030_v2  ;;  %v2067_v58 = vpop.eup %2066  ;;  %v1000_v30 = vmul.f32 1.442695, %v892_v56  ;;  %v627_v4 = vpop.f32.mrf.mxu1 }
 0x110   : > { %v1796_v40 = vpack.c.bf16 %v1225_v53, %v1224_v21  ;;  %2078 = vpow2.f32 %v936_v57  ;;  %v2069_v1 = vpop.eup %2068  ;;  %v938_v26 = vmul.f32 1.442695, %v861_v60  ;;  %v2750_v49 = vadd.f32 %v2722_v25, %v745_v18 }
 0x111   : > { %1832 = vst [vmem:[%s2485_s27 + $0xa0] sm:$0xff] %v1756_v61   ;;  %2080 = vrcp.f32 %v1067_v46  ;;  %v2071_v59 = vpop.eup %2070  ;;  %v1178_v20 = vmul.f32 %v2067_v58, %v2652_v35  ;;  %v777_v8 = vmul.f32 %v2715_v16, %v704_v27  ;;  %v730_v9 = vmul.f32 %v2715_v16, %v587_v29 }
 0x112   : > { %1840 = vst [vmem:[%s2485_s27 + $0xe0] sm:$0xff] %v1796_v40   ;;  %2082 = vpow2.f32 %v968_v19  ;;  %v1032_v13 = vmul.f32 1.442695, %v908_v0  ;;  %v877_v51 = vsub.f32 0.0, %v2750_v49  ;;  %v2759_v52 = vadd.f32 %v2722_v25, %v761_v3 }
 0x113   : > { %v2073_v5 = vpop.eup %2072  ;;  %2084 = vrcp.f32 %v1098_v38  ;;  %v2762_v35 = vadd.f32 %v2722_v25, %v777_v8  ;;  %v2765_v17 = vadd.f32 %v2722_v25, %v730_v9  ;;  %v1194_v28 = vmul.f32 %v2069_v1, %v2665_v55 }
 0x114   : > { %v2075_v41 = vpop.eup %2074  ;;  %v1179_v12 = vmul.f32 %v2073_v5, %v2674_v15  ;;  %2086 = vpow2.f32 %v938_v26  ;;  %v970_v15 = vmul.f32 1.442695, %v877_v51  ;;  %v667_v6 = vpop.f32.mrf.mxu2  ;;  %v893_v31 = vsub.f32 0.0, %v2759_v52 }
 0x115   : > { %v2077_v21 = vpop.eup %2076  ;;  %v1083_v11 = vadd.f32 1.0, %v2075_v41  ;;  %2088 = vpow2.f32 %v1000_v30  ;;  %v707_v7 = vpop.f32.mrf.mxu3  ;;  %v909_v37 = vsub.f32 0.0, %v2762_v35  ;;  %v746_v22 = vmul.f32 %v2715_v16, %v627_v4 }
 0x116   : > { %v2079_v47 = vpop.eup %2078  ;;  %v1681_v24 = vpack.c.bf16 %v1179_v12, %v1178_v20  ;;  %v1099_v48 = vadd.f32 1.0, %v2077_v21  ;;  %v862_v55 = vsub.f32 0.0, %v2765_v17  ;;  %v589_v34 = vpop.f32.mrf.mxu0  ;;  %v762_v45 = vmul.f32 %v2715_v16, %v667_v6 }
 0x117   : > { %v2081_v2 = vpop.eup %2080  ;;  %2090 = vrcp.f32 %v1083_v11  ;;  %v1052_v57 = vadd.f32 1.0, %v2079_v47  ;;  %v2775_v62 = vadd.f32 %v2722_v25, %v746_v22  ;;  %v778_v53 = vmul.f32 %v2715_v16, %v707_v7  ;;  %v629_v29 = vpop.f32.mrf.mxu1 }
 0x118   : > { %v2083_v32 = vpop.eup %2082  ;;  %1817 = vst [vmem:[%s2485_s27 + $0x28] sm:$0xff] %v1681_v24   ;;  %v1195_v36 = vmul.f32 %v2081_v2, %v2688_v10  ;;  %2092 = vrcp.f32 %v1099_v48  ;;  %v1002_v10 = vmul.f32 1.442695, %v893_v31  ;;  %v1210_v56 = vmul.f32 %v2071_v59, %v2668_v44 }
 0x119   : > { %v2085_v38 = vpop.eup %2084  ;;  %v1068_v23 = vadd.f32 1.0, %v2083_v32  ;;  %2094 = vpow2.f32 %v1032_v13  ;;  %v1034_v46 = vmul.f32 1.442695, %v909_v37  ;;  %v731_v60 = vmul.f32 %v2715_v16, %v589_v34 }
 0x11a   : > { %v1721_v18 = vpack.c.bf16 %v1195_v36, %v1194_v28  ;;  %2096 = vpow2.f32 %v970_v15  ;;  %v2087_v27 = vpop.eup %2086  ;;  %v1226_v40 = vmul.f32 %v2085_v38, %v2671_v14  ;;  %v940_v0 = vmul.f32 1.442695, %v862_v55 }
 0x11b   : > { %2098 = vrcp.f32 %v1052_v57  ;;  %v2089_v19 = vpop.eup %2088  ;;  %v1053_v61 = vadd.f32 1.0, %v2087_v27  ;;  %v878_v1 = vsub.f32 0.0, %v2775_v62  ;;  %v2786_v3 = vadd.f32 %v2722_v25, %v762_v45 }
 0x11c   : > { %1825 = vst [vmem:[%s2485_s27 + $0x68] sm:$0xff] %v1721_v18   ;;  %2100 = vrcp.f32 %v1068_v23  ;;  %v2789_v44 = vadd.f32 %v2722_v25, %v731_v60  ;;  %v2793_v14 = vadd.f32 %v2722_v25, %v778_v53  ;;  %v747_v5 = vmul.f32 %v2715_v16, %v629_v29  ;;  %v669_v41 = vpop.f32.mrf.mxu2 }
 0x11d   : > { %v2091_v58 = vpop.eup %2090  ;;  %2102 = vrcp.f32 %v1053_v61  ;;  %v709_v21 = vpop.f32.mrf.mxu3  ;;  %v894_v47 = vsub.f32 0.0, %v2786_v3  ;;  %v763_v2 = vmul.f32 %v2715_v16, %v669_v41 }
 0x11e   : > { %v2093_v26 = vpop.eup %2092  ;;  %v1211_v30 = vmul.f32 %v2091_v58, %v2698_v63  ;;  %2104 = vpow2.f32 %v1002_v10  ;;  %v1084_v63 = vadd.f32 1.0, %v2089_v19  ;;  %v863_v9 = vsub.f32 0.0, %v2789_v44 }
 0x11f   : > { %v2095_v59 = vpop.eup %2094  ;;  %v1227_v4 = vmul.f32 %v2093_v26, %v2701_v54  ;;  %2106 = vpow2.f32 %v1034_v46  ;;  %v972_v54 = vmul.f32 1.442695, %v878_v1  ;;  %v910_v15 = vsub.f32 0.0, %v2793_v14 }
 0x120   : > { %v2097_v20 = vpop.eup %2096  ;;  %v1761_v8 = vpack.c.bf16 %v1211_v30, %v1210_v56  ;;  %2108 = vpow2.f32 %v940_v0  ;;  %v1100_v11 = vadd.f32 1.0, %v2095_v59  ;;  %v942_v24 = vmul.f32 1.442695, %v863_v9 }
 0x121   : > { %v2099_v12 = vpop.eup %2098  ;;  %v1801_v13 = vpack.c.bf16 %v1227_v4, %v1226_v40  ;;  %v1069_v51 = vadd.f32 1.0, %v2097_v20  ;;  %v2802_v6 = vadd.f32 %v2722_v25, %v747_v5  ;;  %v779_v31 = vmul.f32 %v2715_v16, %v709_v21 }
 0x122   : > { %1833 = vst [vmem:[%s2485_s27 + $0xa8] sm:$0xff] %v1761_v8   ;;  %v2101_v48 = vpop.eup %2100  ;;  %v1180_v57 = vmul.f32 %v2099_v12, %v2704_v50  ;;  %v2810_v37 = vadd.f32 %v2722_v25, %v763_v2  ;;  %v1004_v23 = vmul.f32 1.442695, %v894_v47  ;;  %v1036_v18 = vmul.f32 1.442695, %v910_v15 }
 0x123   : > { %1841 = vst [vmem:[%s2485_s27 + $0xe8] sm:$0xff] %v1801_v13   ;;  %2110 = vrcp.f32 %v1069_v51  ;;  %v2103_v28 = vpop.eup %2102  ;;  %v879_v36 = vsub.f32 0.0, %v2802_v6  ;;  %v2813_v55 = vadd.f32 %v2722_v25, %v779_v31  ;;  %v1196_v25 = vmul.f32 %v2101_v48, %v2725_v33 }
 0x124   : > { %2112 = vrcp.f32 %v1084_v63  ;;  %v2105_v7 = vpop.eup %2104  ;;  %v1181_v32 = vmul.f32 %v2103_v28, %v2740_v43  ;;  %v895_v27 = vsub.f32 0.0, %v2810_v37 }
 0x125   : > { %2114 = vpow2.f32 %v972_v54  ;;  %v2107_v22 = vpop.eup %2106  ;;  %v1085_v38 = vadd.f32 1.0, %v2105_v7  ;;  %v974_v43 = vmul.f32 1.442695, %v879_v36  ;;  %v911_v53 = vsub.f32 0.0, %v2813_v55 }
 0x126   : > { %2116 = vpow2.f32 %v942_v24  ;;  %v2109_v50 = vpop.eup %2108  ;;  %v1686_v16 = vpack.c.bf16 %v1181_v32, %v1180_v57  ;;  %v1101_v34 = vadd.f32 1.0, %v2107_v22  ;;  %v1006_v29 = vmul.f32 1.442695, %v895_v27 }
 0x127   : > { %2118 = vrcp.f32 %v1100_v11  ;;  %v1054_v45 = vadd.f32 1.0, %v2109_v50  ;;  %v1038_v0 = vmul.f32 1.442695, %v911_v53 }
 0x128   : > { %2120 = vrcp.f32 %v1085_v38  ;;  %1818 = vst [vmem:[%s2485_s27 + $0x30] sm:$0xff] %v1686_v16  }
 0x129   : > { %v2111_v10 = vpop.eup %2110  ;;  %2122 = vrcp.f32 %v1101_v34 }
 0x12a   : > { %v2113_v19 = vpop.eup %2112  ;;  %v1197_v56 = vmul.f32 %v2111_v10, %v2750_v49  ;;  %2124 = vpow2.f32 %v1004_v23 }
 0x12b   : > { %v2115_v61 = vpop.eup %2114  ;;  %2126 = vpow2.f32 %v1036_v18  ;;  %v1212_v30 = vmul.f32 %v2113_v19, %v2733_v39 }
 0x12c   : > { %v2117_v46 = vpop.eup %2116  ;;  %v1726_v60 = vpack.c.bf16 %v1197_v56, %v1196_v25  ;;  %2128 = vpow2.f32 %v974_v43  ;;  %v1070_v49 = vadd.f32 1.0, %v2115_v61 }
 0x12d   : > { %v2119_v58 = vpop.eup %2118  ;;  %2130 = vrcp.f32 %v1054_v45  ;;  %v1055_v40 = vadd.f32 1.0, %v2117_v46 }
 0x12e   : > { %v2121_v1 = vpop.eup %2120  ;;  %1826 = vst [vmem:[%s2485_s27 + $0x70] sm:$0xff] %v1726_v60   ;;  %v1228_v4 = vmul.f32 %v2119_v58, %v2736_v42 }
 0x12f   : > { %v2123_v26 = vpop.eup %2122  ;;  %v1213_v33 = vmul.f32 %v2121_v1, %v2759_v52  ;;  %2132 = vrcp.f32 %v1055_v40 }
 0x130   : > { %v2125_v59 = vpop.eup %2124  ;;  %v1229_v5 = vmul.f32 %v2123_v26, %v2762_v35  ;;  %2134 = vpow2.f32 %v1006_v29 }
 0x131   : > { %v2127_v20 = vpop.eup %2126  ;;  %v1766_v8 = vpack.c.bf16 %v1213_v33, %v1212_v30  ;;  %2136 = vpow2.f32 %v1038_v0  ;;  %v1086_v39 = vadd.f32 1.0, %v2125_v59 }
 0x132   : > { %v2129_v63 = vpop.eup %2128  ;;  %v1806_v9 = vpack.c.bf16 %v1229_v5, %v1228_v4  ;;  %2138 = vrcp.f32 %v1070_v49  ;;  %v1102_v52 = vadd.f32 1.0, %v2127_v20 }
 0x133   : > { %v2131_v41 = vpop.eup %2130  ;;  %1834 = vst [vmem:[%s2485_s27 + $0xb0] sm:$0xff] %v1766_v8   ;;  %v1071_v12 = vadd.f32 1.0, %v2129_v63 }
 0x134   : > { %1842 = vst [vmem:[%s2485_s27 + $0xf0] sm:$0xff] %v1806_v9   ;;  %v1182_v35 = vmul.f32 %v2131_v41, %v2765_v17 }
 0x135   : > { %v2133_v13 = vpop.eup %2132  ;;  %2140 = vrcp.f32 %v1071_v12 }
 0x136   : > { %v2135_v42 = vpop.eup %2134  ;;  %v1183_v51 = vmul.f32 %v2133_v13, %v2789_v44  ;;  %2142 = vrcp.f32 %v1086_v39 }
 0x137   : > { %v2137_v54 = vpop.eup %2136  ;;  %v1087_v21 = vadd.f32 1.0, %v2135_v42  ;;  %2144 = vrcp.f32 %v1102_v52 }
 0x138   : > { %v1691_v11 = vpack.c.bf16 %v1183_v51, %v1182_v35  ;;  %v1103_v47 = vadd.f32 1.0, %v2137_v54  ;;  %v2139_v24 = vpop.eup %2138 }
 0x139   : > { %2146 = vrcp.f32 %v1087_v21  ;;  %v1198_v15 = vmul.f32 %v2139_v24, %v2775_v62 }
 0x13a   : > { %1819 = vst [vmem:[%s2485_s27 + $0x38] sm:$0xff] %v1691_v11   ;;  %2148 = vrcp.f32 %v1103_v47 }
 0x13b   : > { %v2141_v48 = vpop.eup %2140 }
 0x13c   : > { %v1199_v17 = vmul.f32 %v2141_v48, %v2802_v6  ;;  %v2143_v44 = vpop.eup %2142 }
 0x13d   : > { %v2145_v2 = vpop.eup %2144  ;;  %v1214_v7 = vmul.f32 %v2143_v44, %v2786_v3 }
 0x13e   : > { %v1731_v28 = vpack.c.bf16 %v1199_v17, %v1198_v15  ;;  %v1230_v6 = vmul.f32 %v2145_v2, %v2793_v14 }
 0x13f   : > { %v2147_v57 = vpop.eup %2146 }
 0x140   : > { %v2149_v31 = vpop.eup %2148  ;;  %1827 = vst [vmem:[%s2485_s27 + $0x78] sm:$0xff] %v1731_v28   ;;  %v1215_v62 = vmul.f32 %v2147_v57, %v2810_v37 }
 0x141   : > { %v1231_v32 = vmul.f32 %v2149_v31, %v2813_v55 }
 0x142   : > { %v1771_v36 = vpack.c.bf16 %v1215_v62, %v1214_v7 }
 0x143   : > { %v1811_v22 = vpack.c.bf16 %v1231_v32, %v1230_v6 }
 0x144   : > { %1835 = vst [vmem:[%s2485_s27 + $0xb8] sm:$0xff] %v1771_v36  }
 0x145   : > { %1843 = vst [vmem:[%s2485_s27 + $0xf8] sm:$0xff] %v1811_v22  }
 0x146   : > { %2179 = shalt.err (!%p2176_p3)
}
 0x147   : > { %s2217_s22 = smov 64   ;;  %s2218_s27 = smov 4  }
 0x148   : > { %1850 = dma.vmem_to_hbm [thread:$0]  (%p2282_p5), %s1374_s10, 4096, %s1376_s19, %s1361_s11, %s2217_s22, %s2217_s22, %s2218_s27  }
 0x149 PF: > { %p1856_p4 = scmp.ge.s32.totalorder %s2214_s18, 2  ;;  %s1390_s30 = sand.u32 1, %s2202_s15  }
 0x14a   : > { %s1391_s5 = scalar_lea.sflag [#allocation3], %s1390_s30 }
 0x14b   : > { %p1853_p7 = pnand %p1856_p4, %p2286_p6 }
 0x14d   : > { %p1854_p8 = pneg %p1853_p7 }
 0x14f   : > { %2197 = dma.done.wait (%p1854_p8), %s1391_s5, 4096  }
 0x150   : > { %2199 = vsyncadd (%p1854_p8), %s1391_s5, 4294963200  ;;  %p14_p9 = scmp.ge.s32.totalorder %s2269_s21, 6   ;;  %s2880_s15 = smov %s2206_s16 }
 0x151   : > { %s2881_s16 = smov %s2210_s17  ;;  %s2882_s17 = smov %s2280_s24 }
 0x152   : > { %s2883_s18 = smov %s2269_s21  ;;  %16 = sbr.rel (!%p14_p9) target bundleno = 3 (0x3), region = 71 }
 0x157   :  { %1397 = vsyncpa [#allocation3], 1 }
 0x158   :  { %1399 = vsyncpa [#allocation3 + $0x1], 1 }

</bundles_post_ra>
